<compile_context>
chip_gen: v7x
topology: tpu7x:2x2x1
jax: 0.10.0
libtpu: 0.0.40
codegen_flags: <defaults>
</compile_context>

<pallas_src>
import jax
import jax.numpy as jnp
from jax import lax
from jax.experimental import pallas as pl
from jax.experimental.pallas import tpu as pltpu

INPUT_DIM = 9  # position(3) + normal(3) + view direction(3)


def _round_up(v, m):
    return (v + m - 1) // m * m


def _slab_layout(hidden_dim, num_layers, skip_connections):
    """Static layout of the packed weight / bias slabs, in kernel consumption order.

    Weight pieces (out_rows, in_cols):
      layer 0           : (H, 9)
      hidden layer i>=1 : (H, H)           if i not in skip
                          (H, H), (H, 9)   if i in skip (split cat([h, x]) matmul)
      rgb head          : (3, H)
    Each piece starts on an 8-row (sublane) boundary; lanes padded to >=128.
    """
    skip = set(skip_connections)
    w_shapes = [(hidden_dim, INPUT_DIM)]
    b_sizes = [hidden_dim]
    for i in range(1, num_layers):
        if i in skip:
            w_shapes += [(hidden_dim, hidden_dim), (hidden_dim, INPUT_DIM)]
        else:
            w_shapes += [(hidden_dim, hidden_dim)]
        b_sizes.append(hidden_dim)
    w_shapes.append((3, hidden_dim))
    b_sizes.append(3)

    w_offs, r = [], 0
    for out, _ in w_shapes:
        w_offs.append(r)
        r += _round_up(out, 8)
    w_rows = r
    lane_w = _round_up(max(inn for _, inn in w_shapes), 128)

    b_offs, r = [], 0
    for out in b_sizes:
        b_offs.append(r)
        r += _round_up(out, 8)
    b_rows = r
    return w_shapes, w_offs, w_rows, lane_w, b_sizes, b_offs, b_rows


def init_params(key, hidden_dim, num_layers, skip_connections):
    """PyTorch nn.Linear init U(+-1/sqrt(fan_in)); returns [(W (out,in), b (out,)), ...]
    with input widths matching the forward() semantics."""
    skip = set(skip_connections)

    def linear(k, fan_in, fan_out):
        k1, k2 = jax.random.split(k)
        bound = 1.0 / (fan_in ** 0.5)
        w = jax.random.uniform(k1, (fan_out, fan_in), jnp.float32, -bound, bound)
        b = jax.random.uniform(k2, (fan_out,), jnp.float32, -bound, bound)
        return w, b

    keys = jax.random.split(key, num_layers + 1)
    params = [linear(keys[0], INPUT_DIM, hidden_dim)]
    for i in range(1, num_layers):
        fan_in = hidden_dim + INPUT_DIM if i in skip else hidden_dim
        params.append(linear(keys[i], fan_in, hidden_dim))
    params.append(linear(keys[num_layers], hidden_dim, 3))
    return params


def pack_params(layer_params, hidden_dim, num_layers, skip_connections):
    """Pack per-layer (W, b) into one f32 weight slab and one f32 bias slab."""
    skip = set(skip_connections)
    w_shapes, w_offs, w_rows, lane_w, b_sizes, b_offs, b_rows = _slab_layout(
        hidden_dim, num_layers, skip_connections)

    pieces = [layer_params[0][0]]
    biases = [layer_params[0][1]]
    for i in range(1, num_layers):
        w, b = layer_params[i]
        if i in skip:
            # forward() concatenates cat([h, x]) -> first H cols act on h, last 9 on x.
            pieces += [w[:, :hidden_dim], w[:, hidden_dim:]]
        else:
            pieces.append(w)
        biases.append(b)
    pieces.append(layer_params[num_layers][0])
    biases.append(layer_params[num_layers][1])

    w_slab = jnp.zeros((w_rows, lane_w), jnp.float32)
    for w, off, (out, inn) in zip(pieces, w_offs, w_shapes):
        assert w.shape == (out, inn), (w.shape, (out, inn))
        w_slab = w_slab.at[off:off + out, :inn].set(w.astype(jnp.float32))

    b_slab = jnp.zeros((b_rows, 1), jnp.float32)
    for b, off, out in zip(biases, b_offs, b_sizes):
        assert b.shape == (out,)
        b_slab = b_slab.at[off:off + out, 0].set(b.astype(jnp.float32))
    return w_slab, b_slab


def make_color_kernel(hidden_dim, num_layers, skip_connections, *,
                      x_rowmajor, carry_dtype=jnp.bfloat16):
    skip = set(skip_connections)
    w_shapes, w_offs, _, _, b_sizes, b_offs, _ = _slab_layout(
        hidden_dim, num_layers, skip_connections)

    def kernel(x_ref, w_ref, b_ref, out_ref):
        def wpiece(k):                       # bf16 MXU operand (static slab slice)
            out, inn = w_shapes[k]
            off = w_offs[k]
            return w_ref[off:off + out, 0:inn].astype(jnp.bfloat16)

        def bpiece(k):                       # (out, 1) f32, lane-broadcast in the add
            out = b_sizes[k]
            off = b_offs[k]
            return b_ref[off:off + out, :]

        x_bf = x_ref[...].astype(jnp.bfloat16)      # (9, TN) or (TN, 9)

        def x_dot(w):
            # Feature-major x: plain dot.  Row-major x: contract x's LAST dim on the
            # MXU (q.kT-style) so the transpose never materializes in HBM or VMEM.
            if x_rowmajor:
                return lax.dot_general(w, x_bf, (((1,), (1,)), ((), ())),
                                       preferred_element_type=jnp.float32)
            return jnp.dot(w, x_bf, preferred_element_type=jnp.float32)

        # layer 0: Linear(9 -> H) + ReLU   (feature-major: h = W0 @ x + b0)
        h = jnp.maximum(x_dot(wpiece(0)) + bpiece(0), 0.0).astype(carry_dtype)

        wi = 1
        for i in range(1, num_layers):
            if i in skip:
                pre = (jnp.dot(wpiece(wi), h.astype(jnp.bfloat16),
                               preferred_element_type=jnp.float32)
                       + x_dot(wpiece(wi + 1))
                       + bpiece(i))
                wi += 2
            else:
                pre = (jnp.dot(wpiece(wi), h.astype(jnp.bfloat16),
                               preferred_element_type=jnp.float32)
                       + bpiece(i))
                wi += 1
            h = jnp.maximum(pre, 0.0).astype(carry_dtype)

        # rgb head: Linear(H -> 3) + sigmoid (exp + approx reciprocal -> EUP slot)
        z = jnp.dot(wpiece(wi), h.astype(jnp.bfloat16),
                    preferred_element_type=jnp.float32) + bpiece(num_layers)
        rgb = pl.reciprocal(1.0 + jnp.exp(-z), approx=True)
        out_ref[...] = rgb.astype(out_ref.dtype)     # (3, TN), lane-dense store

    return kernel


def _choose_tile_n(n, max_tile=4096, min_steps=4):
    """Largest power-of-two tile <= max_tile dividing n with >= min_steps grid steps
    (>= 2 per v7x TensorCore).  Per-step VMEM is tiny, so only grid length (v7x
    megacore) and v5e spill pressure bound the tile, not VMEM."""
    tile = 128
    if n % tile:
        return n   # odd N: single full-array step (block == full dims is legal)
    while (tile * 2 <= max_tile and n % (tile * 2) == 0
           and n // (tile * 2) >= min_steps):
        tile *= 2
    return tile


def _run_color_kernel(x, w_slab, b_slab, *, hidden_dim, num_layers,
                      skip_connections, tile_n, x_rowmajor, carry_dtype):
    if x_rowmajor:
        n, in_dim = x.shape
    else:
        in_dim, n = x.shape
    assert in_dim == INPUT_DIM
    tile_n = tile_n if tile_n is not None else _choose_tile_n(n)
    assert n % tile_n == 0, "pad N to a multiple of tile_n"

    kernel = make_color_kernel(hidden_dim, num_layers, skip_connections,
                               x_rowmajor=x_rowmajor, carry_dtype=carry_dtype)

    if x_rowmajor:
        x_spec = pl.BlockSpec((tile_n, INPUT_DIM), lambda i: (i, 0))
    else:
        x_spec = pl.BlockSpec((INPUT_DIM, tile_n), lambda i: (0, i))
    # Constant index maps: Pallas DMAs each slab once and keeps it VMEM-resident.
    w_spec = pl.BlockSpec(w_slab.shape, lambda i: (0, 0))
    b_spec = pl.BlockSpec(b_slab.shape, lambda i: (0, 0))
    out_spec = pl.BlockSpec((3, tile_n), lambda i: (0, i))

    skip = set(skip_connections)
    flops_pt = 2 * (INPUT_DIM * hidden_dim
                    + sum(hidden_dim * hidden_dim
                          + (INPUT_DIM * hidden_dim if i in skip else 0)
                          for i in range(1, num_layers))
                    + hidden_dim * 3)
    cost = pl.CostEstimate(
        flops=flops_pt * n,
        transcendentals=3 * n,
        bytes_accessed=n * (INPUT_DIM + 3) * 4
                       + int(w_slab.size) * 4 + int(b_slab.size) * 4,
    )

    return pl.pallas_call(
        kernel,
        out_shape=jax.ShapeDtypeStruct((3, n), jnp.float32),
        grid_spec=pltpu.PrefetchScalarGridSpec(
            num_scalar_prefetch=0,
            grid=(n // tile_n,),
            in_specs=[x_spec, w_spec, b_spec],
            out_specs=out_spec,
        ),
        compiler_params=pltpu.CompilerParams(dimension_semantics=("parallel",)),
        cost_estimate=cost,
    )(x, w_slab, b_slab)


def color_network_fm(x_t, w_slab, b_slab, *, hidden_dim, num_layers,
                     skip_connections, tile_n=None, carry_dtype=jnp.bfloat16):
    """Primary (feature-major) API: x_t (9, N) f32 -> rgb_t (3, N) f32.
    Zero layout transposes anywhere; producers/consumers should hold feature-major
    data.  On v5e pass carry_dtype=jnp.float32 (no bf16 VPU)."""
    return _run_color_kernel(x_t, w_slab, b_slab, hidden_dim=hidden_dim,
                             num_layers=num_layers,
                             skip_connections=skip_connections,
                             tile_n=tile_n, x_rowmajor=False,
                             carry_dtype=carry_dtype)


def color_network(x, w_slab, b_slab, *, hidden_dim, num_layers,
                  skip_connections, tile_n=None, carry_dtype=jnp.bfloat16):
    """Module-convention wrapper: x (N, 9) f32 -> rgb (N, 3) f32.
    The kernel consumes the row-major input directly (MXU contracts x's last dim),
    so there is NO XLA input transpose; only the small (3, N) -> (N, 3) output
    transpose remains to honor the nn.Module return convention.  Consumers that can
    accept (3, N) should call color_network_fm instead."""
    rgb_t = _run_color_kernel(x, w_slab, b_slab, hidden_dim=hidden_dim,
                              num_layers=num_layers,
                              skip_connections=skip_connections,
                              tile_n=tile_n, x_rowmajor=True,
                              carry_dtype=carry_dtype)
    return rgb_t.T


def color_network_ref(x, layer_params, *, hidden_dim, num_layers, skip_connections):
    """Pure-JAX f32 mirror of the PyTorch forward() (including the [h, x] concat)."""
    skip = set(skip_connections)
    w, b = layer_params[0]
    h = jax.nn.relu(x @ w.T + b)
    for i in range(1, num_layers):
        w, b = layer_params[i]
        if i in skip:
            h = jnp.concatenate([h, x], axis=-1)
        h = jax.nn.relu(h @ w.T + b)
    w, b = layer_params[num_layers]
    return jax.nn.sigmoid(h @ w.T + b)


if __name__ == "__main__":
    hidden_dim = 32
    num_layers = 4
    skip_connections = [2]

    key = jax.random.PRNGKey(0)
    kx, kp = jax.random.split(key)

    n_points = 8192                       # tile_n auto-picks 2048 -> 4 grid steps
    x = jax.random.normal(kx, (n_points, INPUT_DIM), jnp.float32)   # (N, 9)
    x_t = jnp.asarray(x.T)                # feature-major producers build (9, N) directly

    layer_params = init_params(kp, hidden_dim, num_layers, skip_connections)
    w_slab, b_slab = pack_params(layer_params, hidden_dim, num_layers,
                                 skip_connections)

    # Primary feature-major path (the real API): (9, N) -> (3, N), no transposes.
    rgb_t = color_network_fm(x_t, w_slab, b_slab, hidden_dim=hidden_dim,
                             num_layers=num_layers,
                             skip_connections=skip_connections)
    rgb_t = jax.block_until_ready(rgb_t)

    # Row-major compatibility path: (N, 9) -> (N, 3), input consumed in-kernel.
    rgb_rm = color_network(x, w_slab, b_slab, hidden_dim=hidden_dim,
                           num_layers=num_layers,
                           skip_connections=skip_connections)
    rgb_rm = jax.block_until_ready(rgb_rm)

    rgb_ref = color_network_ref(x, layer_params, hidden_dim=hidden_dim,
                                num_layers=num_layers,
                                skip_connections=skip_connections)

    assert rgb_t.shape == (3, n_points)
    assert rgb_rm.shape == (n_points, 3)
    err_fm = float(jnp.max(jnp.abs(rgb_t.T - rgb_ref)))
    err_rm = float(jnp.max(jnp.abs(rgb_rm - rgb_ref)))
    # bf16 MXU operands / bf16 hidden carry / approx reciprocal vs f32 reference.
    assert err_fm < 2e-2, err_fm
    assert err_rm < 2e-2, err_rm
    print("KERNEL_OK")
</pallas_src>

<mosaic_0001>
module attributes {stable_mosaic.version = 11 : i64} {
  func.func @kernel(%arg0: i32, %arg1: memref<9x2048xf32, #tpu.memory_space<vmem>>, %arg2: memref<168x128xf32, #tpu.memory_space<vmem>>, %arg3: memref<136x1xf32, #tpu.memory_space<vmem>>, %arg4: memref<3x2048xf32, #tpu.memory_space<vmem>>) attributes {dimension_semantics = [#tpu.dimension_semantics<parallel>], iteration_bounds = array<i64: 4>, scalar_prefetch = 0 : i64, scratch_operands = 0 : i64, tpu.core_type = #tpu.core_type<tc>, window_params = [{transform_indices = @transform_0, window_bounds = array<i64: 9, 2048>}, {pipeline_mode = #tpu.pipeline_mode<synchronous>, transform_indices = @transform_1, window_bounds = array<i64: 168, 128>}, {pipeline_mode = #tpu.pipeline_mode<synchronous>, transform_indices = @transform_2, window_bounds = array<i64: 136, 1>}, {transform_indices = @transform_3, window_bounds = array<i64: 3, 2048>}]} {
    %c0 = arith.constant 0 : index
    %c0_0 = arith.constant 0 : index
    %0 = vector.load %arg1[%c0, %c0_0] : memref<9x2048xf32, #tpu.memory_space<vmem>>, vector<9x2048xf32>
    %1 = arith.truncf %0 : vector<9x2048xf32> to vector<9x2048xbf16>
    %c0_1 = arith.constant 0 : index
    %c0_2 = arith.constant 0 : index
    %2 = vector.load %arg2[%c0_1, %c0_2] : memref<168x128xf32, #tpu.memory_space<vmem>>, vector<32x9xf32>
    %3 = arith.truncf %2 : vector<32x9xf32> to vector<32x9xbf16>
    %cst = arith.constant dense<0.000000e+00> : vector<32x2048xf32>
    %4 = tpu.matmul %3, %1, %cst {dimension_numbers = #tpu.dot_dimension_numbers<[1], [0], [0], [1], [0, 0, 1, 1], [], []>} : vector<32x9xbf16>, vector<9x2048xbf16>, vector<32x2048xf32> -> vector<32x2048xf32>
    %c0_3 = arith.constant 0 : index
    %c0_4 = arith.constant 0 : index
    %5 = vector.load %arg3[%c0_3, %c0_4] : memref<136x1xf32, #tpu.memory_space<vmem>>, vector<32x1xf32>
    %6 = vector.broadcast %5 : vector<32x1xf32> to vector<32x2048xf32>
    %7 = arith.addf %4, %6 : vector<32x2048xf32>
    %cst_5 = arith.constant 0.000000e+00 : f32
    %8 = vector.broadcast %cst_5 : f32 to vector<32x2048xf32>
    %9 = arith.maximumf %7, %8 : vector<32x2048xf32>
    %10 = arith.truncf %9 : vector<32x2048xf32> to vector<32x2048xbf16>
    %c32 = arith.constant 32 : index
    %c0_6 = arith.constant 0 : index
    %11 = vector.load %arg2[%c32, %c0_6] : memref<168x128xf32, #tpu.memory_space<vmem>>, vector<32x32xf32>
    %12 = arith.truncf %11 : vector<32x32xf32> to vector<32x32xbf16>
    %cst_7 = arith.constant dense<0.000000e+00> : vector<32x2048xf32>
    %13 = tpu.matmul %12, %10, %cst_7 {dimension_numbers = #tpu.dot_dimension_numbers<[1], [0], [0], [1], [0, 0, 1, 1], [], []>} : vector<32x32xbf16>, vector<32x2048xbf16>, vector<32x2048xf32> -> vector<32x2048xf32>
    %c32_8 = arith.constant 32 : index
    %c0_9 = arith.constant 0 : index
    %14 = vector.load %arg3[%c32_8, %c0_9] : memref<136x1xf32, #tpu.memory_space<vmem>>, vector<32x1xf32>
    %15 = vector.broadcast %14 : vector<32x1xf32> to vector<32x2048xf32>
    %16 = arith.addf %13, %15 : vector<32x2048xf32>
    %cst_10 = arith.constant 0.000000e+00 : f32
    %17 = vector.broadcast %cst_10 : f32 to vector<32x2048xf32>
    %18 = arith.maximumf %16, %17 : vector<32x2048xf32>
    %19 = arith.truncf %18 : vector<32x2048xf32> to vector<32x2048xbf16>
    %c64 = arith.constant 64 : index
    %c0_11 = arith.constant 0 : index
    %20 = vector.load %arg2[%c64, %c0_11] : memref<168x128xf32, #tpu.memory_space<vmem>>, vector<32x32xf32>
    %21 = arith.truncf %20 : vector<32x32xf32> to vector<32x32xbf16>
    %cst_12 = arith.constant dense<0.000000e+00> : vector<32x2048xf32>
    %22 = tpu.matmul %21, %19, %cst_12 {dimension_numbers = #tpu.dot_dimension_numbers<[1], [0], [0], [1], [0, 0, 1, 1], [], []>} : vector<32x32xbf16>, vector<32x2048xbf16>, vector<32x2048xf32> -> vector<32x2048xf32>
    %c96 = arith.constant 96 : index
    %c0_13 = arith.constant 0 : index
    %23 = vector.load %arg2[%c96, %c0_13] : memref<168x128xf32, #tpu.memory_space<vmem>>, vector<32x9xf32>
    %24 = arith.truncf %23 : vector<32x9xf32> to vector<32x9xbf16>
    %cst_14 = arith.constant dense<0.000000e+00> : vector<32x2048xf32>
    %25 = tpu.matmul %24, %1, %cst_14 {dimension_numbers = #tpu.dot_dimension_numbers<[1], [0], [0], [1], [0, 0, 1, 1], [], []>} : vector<32x9xbf16>, vector<9x2048xbf16>, vector<32x2048xf32> -> vector<32x2048xf32>
    %26 = arith.addf %22, %25 : vector<32x2048xf32>
    %c64_15 = arith.constant 64 : index
    %c0_16 = arith.constant 0 : index
    %27 = vector.load %arg3[%c64_15, %c0_16] : memref<136x1xf32, #tpu.memory_space<vmem>>, vector<32x1xf32>
    %28 = vector.broadcast %27 : vector<32x1xf32> to vector<32x2048xf32>
    %29 = arith.addf %26, %28 : vector<32x2048xf32>
    %cst_17 = arith.constant 0.000000e+00 : f32
    %30 = vector.broadcast %cst_17 : f32 to vector<32x2048xf32>
    %31 = arith.maximumf %29, %30 : vector<32x2048xf32>
    %32 = arith.truncf %31 : vector<32x2048xf32> to vector<32x2048xbf16>
    %c128 = arith.constant 128 : index
    %c0_18 = arith.constant 0 : index
    %33 = vector.load %arg2[%c128, %c0_18] : memref<168x128xf32, #tpu.memory_space<vmem>>, vector<32x32xf32>
    %34 = arith.truncf %33 : vector<32x32xf32> to vector<32x32xbf16>
    %cst_19 = arith.constant dense<0.000000e+00> : vector<32x2048xf32>
    %35 = tpu.matmul %34, %32, %cst_19 {dimension_numbers = #tpu.dot_dimension_numbers<[1], [0], [0], [1], [0, 0, 1, 1], [], []>} : vector<32x32xbf16>, vector<32x2048xbf16>, vector<32x2048xf32> -> vector<32x2048xf32>
    %c96_20 = arith.constant 96 : index
    %c0_21 = arith.constant 0 : index
    %36 = vector.load %arg3[%c96_20, %c0_21] : memref<136x1xf32, #tpu.memory_space<vmem>>, vector<32x1xf32>
    %37 = vector.broadcast %36 : vector<32x1xf32> to vector<32x2048xf32>
    %38 = arith.addf %35, %37 : vector<32x2048xf32>
    %cst_22 = arith.constant 0.000000e+00 : f32
    %39 = vector.broadcast %cst_22 : f32 to vector<32x2048xf32>
    %40 = arith.maximumf %38, %39 : vector<32x2048xf32>
    %41 = arith.truncf %40 : vector<32x2048xf32> to vector<32x2048xbf16>
    %c160 = arith.constant 160 : index
    %c0_23 = arith.constant 0 : index
    %42 = vector.load %arg2[%c160, %c0_23] : memref<168x128xf32, #tpu.memory_space<vmem>>, vector<3x32xf32>
    %43 = arith.truncf %42 : vector<3x32xf32> to vector<3x32xbf16>
    %cst_24 = arith.constant dense<0.000000e+00> : vector<3x2048xf32>
    %44 = tpu.matmul %43, %41, %cst_24 {dimension_numbers = #tpu.dot_dimension_numbers<[1], [0], [0], [1], [0, 0, 1, 1], [], []>} : vector<3x32xbf16>, vector<32x2048xbf16>, vector<3x2048xf32> -> vector<3x2048xf32>
    %c128_25 = arith.constant 128 : index
    %c0_26 = arith.constant 0 : index
    %45 = vector.load %arg3[%c128_25, %c0_26] : memref<136x1xf32, #tpu.memory_space<vmem>>, vector<3x1xf32>
    %46 = vector.broadcast %45 : vector<3x1xf32> to vector<3x2048xf32>
    %47 = arith.addf %44, %46 : vector<3x2048xf32>
    %cst_27 = arith.constant 0.000000e+00 : f32
    %48 = vector.broadcast %cst_27 : f32 to vector<3x2048xf32>
    %49 = arith.subf %48, %47 : vector<3x2048xf32>
    %50 = math.exp %49 : vector<3x2048xf32>
    %cst_28 = arith.constant 1.000000e+00 : f32
    %51 = vector.broadcast %cst_28 : f32 to vector<3x2048xf32>
    %52 = arith.addf %51, %50 : vector<3x2048xf32>
    %53 = tpu.reciprocal %52 {approx = true} : vector<3x2048xf32> -> vector<3x2048xf32>
    %c0_29 = arith.constant 0 : index
    %c0_30 = arith.constant 0 : index
    %54 = vector.load %arg4[%c0_29, %c0_30] : memref<3x2048xf32, #tpu.memory_space<vmem>>, vector<3x2048xf32>
    tpu.vector_store %arg4[%c0_29, %c0_30], %53 {strides = array<i32>} : memref<3x2048xf32, #tpu.memory_space<vmem>>, vector<3x2048xf32>,
    return
  }
  func.func @transform_0(%arg0: i32) -> (i32, i32) {
    %c0_i32 = arith.constant 0 : i32
    %c0_i32_0 = arith.constant 0 : i32
    return %c0_i32, %arg0 : i32, i32
  }
  func.func @transform_1(%arg0: i32) -> (i32, i32) {
    %c0_i32 = arith.constant 0 : i32
    %c0_i32_0 = arith.constant 0 : i32
    %c0_i32_1 = arith.constant 0 : i32
    return %c0_i32, %c0_i32_0 : i32, i32
  }
  func.func @transform_2(%arg0: i32) -> (i32, i32) {
    %c0_i32 = arith.constant 0 : i32
    %c0_i32_0 = arith.constant 0 : i32
    %c0_i32_1 = arith.constant 0 : i32
    return %c0_i32, %c0_i32_0 : i32, i32
  }
  func.func @transform_3(%arg0: i32) -> (i32, i32) {
    %c0_i32 = arith.constant 0 : i32
    %c0_i32_0 = arith.constant 0 : i32
    return %c0_i32, %arg0 : i32, i32
  }
}

</mosaic_0001>

<bundles_post_ra>
// kernel: tpu_custom_call.1
= control target key start
LH: loop header
LB: loop body
LE: loop exit
PB: predicated region body
PF: predicated region fallthrough
CT: control target
= control target key end

     0   :  { %8 = vsyncpa [#allocation3], 0  ;;  %s4997_s0 = inlined_call_operand.hbm [shape: f32[9,8192], index: 0, kind: input, shape index: {}]   ;;  %s4998_s1 = inlined_call_operand.hbm [shape: f32[168,128], index: 1, kind: input, shape index: {}]   ;;  %s4999_s2 = inlined_call_operand.vmem [shape: f32[136,1], index: 2, kind: input, shape index: {}]   ;;  %s5000_s3 = inlined_call_operand.hbm [shape: f32[3,8192], index: 3, kind: output, shape index: {}]  }
   0x1   :  { %10 = vsyncpa [#allocation3 + $0x1], 0 }
   0x2   :  { %11 = vsyncpa [#allocation6], 0 }
   0x3   :  { %12 = vsyncpa [#allocation4], 0 }
   0x4   :  { %14 = vsyncpa [#allocation4 + $0x1], 0  ;;  %s4045_s12 = smov 0   ;;  %s4047_s13 = smov 0  }
   0x5   :  { %s4049_s14 = smov 0   ;;  %s4051_s15 = smov 0  }
   0x6 LB: > { %s4066_s16 = sadd.s32 4294967295, %s4014_s15   ;;  %s3587_s17 = sadd.s32 4294967294, %s4014_s15   ;;  %s4014_s15 = sphi %s4051_s15, %s5023_s15   ;;  %s4010_s14 = sphi %s4049_s14, %s5022_s14   ;;  %s4006_s13 = sphi %s4047_s13, %s5021_s13   ;;  %s4002_s12 = sphi %s4045_s12, %s5020_s12  }
   0x7   : > { %s4070_s18 = sadd.s32 1, %s4014_s15   ;;  %s27_s19 = sadd.s32 1, %s4010_s14 }
   0x8   : > { %s24_s20 = ssub.s32 %s4014_s15, %s4070_s18  ;;  %p34_p0 = scmp.ne.s32.totalorder %s4010_s14, %s4006_s13 }
   0x9   : > { %p25_p1 = scmp.eq.s32.totalorder %s24_s20, 0  ;;  %p35_p2 = scmp.eq.s32.totalorder %s4014_s15, 0 }
   0xa   : > { %p40_p3 = scmp.ne.s32.totalorder %s4006_s13, %s4002_s12  ;;  %p5001_p4 = scmp.eq.s32.totalorder %s4066_s16, 0 }
   0xb   : > { %s4082_s21 = scalar_select %p25_p1, %s4010_s14, %s27_s19  }
   0xc   : > { %p4084_p5 = por %p35_p2, %p34_p0  ;;  %p4090_p6 = por %p5001_p4, %p40_p3 }
   0xd   : > { %p106_p7 = scmp.eq.s32.totalorder %s4066_s16, 3  ;;  %p112_p8 = scmp.eq.s32.totalorder %s3587_s17, 3 }
   0xe   : > { %s5005_s22 = scalar_select %p4084_p5, 1, 0 }
   0xf   : > { %s5006_s23 = scalar_select %p4090_p6, 1, 0 }
  0x10   : > { %p3588_p9 = scmp.ge.s32.totalorder %s4014_s15, 1  ;;  %p119_p10 = scmp.lt.s32.totalorder %s4014_s15, 5 }
  0x11   : > { %p4097_p11 = por %p106_p7, %p34_p0  ;;  %p4101_p12 = por %p112_p8, %p40_p3 }
  0x12   : > { %p4105_p13 = pnand %p3588_p9, %p119_p10  ;;  %s4016_s27 = smov [#allocation5]  }
  0x13   : > { %s5007_s24 = scalar_select %p4097_p11, 1, 0 }
  0x14   : > { %s5008_s25 = scalar_select %p4101_p12, 1, 0 }
  0x15   : > { %s5009_s26 = scalar_select %p4105_p13, 1, 0 }
  0x16   : > { %p3765_p1 = pneg %p4105_p13  ;;  %s131_s28 = sshll.u32 %s4016_s27, 4  ;;  %s132_s28 = int_to_ptr.vmem [resolvable:$true] %s131_s28 }
  0x17   : > { %s148_s30 = sand.u32 1, %s4010_s14   ;;  %s3886_s6 = scalar_lea.hbm %s4998_s1, 2688 }
  0x18   : > { %p4113_p2 = pnand %p3765_p1, %p5001_p4  ;;  %p3887_p3 = scmp.ne.s32.totalorder %s4998_s1, %s3886_s6 }
  0x19   : > { %p3893_p10 = scmp.lt.u32.totalorder %s3886_s6, %s4998_s1 }
  0x1a   : > { %p3888_p7 = pneg %p4113_p2 }
  0x1c   : > { %p3889_p8 = pnand %p3888_p7, %p3887_p3 }
  0x1e   : > { %p3890_p9 = pneg %p3889_p8 }
  0x20   : > { %p3895_p1 = pnand %p3893_p10, %p3890_p9 }
  0x22   : > { %3898 = shalt.err (!%p3895_p1)
}
  0x23   : > { %s3899_s11 = scalar_lea.vmem %s132_s28, 2688  ;;  %p3907_p11 = scmp.lt.s32.totalorder %s132_s28, %s132_s28 }
  0x24   : > { %p3900_p4 = scmp.ne.s32.totalorder %s132_s28, %s3899_s11  ;;  %p3908_p6 = scmp.lt.s32.totalorder %s3899_s11, %s3899_s11 }
  0x26   : > { %p3902_p0 = pnand %p3900_p4, %p3888_p7  ;;  %p3909_p13 = por %p3908_p6, %p3907_p11 }
  0x28   : > { %p3903_p12 = pneg %p3902_p0 }
  0x2a   : > { %p3910_p5 = pnand %p3909_p13, %p3903_p12 }
  0x2c   : > { %3913 = shalt.err (!%p3910_p5)
}
  0x2d   : > { %s4017_s17 = smov 128   ;;  %s4018_s19 = smov 8  }
  0x2e   : > { %3768 = dma.hbm_to_vmem [thread:$0]  (!%p4113_p2), %s4998_s1, 2688, %s132_s28, [#allocation6], %s4017_s17, %s4017_s17, %s4018_s19  }
  0x2f   : > { %p5011_p4 = scmp.ne.s32.totalorder %s5005_s22, 0  ;;  %p5012_p0 = scmp.lt.s32.totalorder %s4014_s15, 4 }
  0x30   : > { %s3591_s5 = sshll.u32 %s148_s30, 8  ;;  %s3691_s6 = sshll.u32 %s4014_s15, 11 }
  0x31   : > { %p4141_p3 = pnand %p5012_p0, %p5011_p4  ;;  %s4149_s29 = scalar_lea.hbm %s4997_s0, %s3691_s6 }
  0x32   : > { %s152_s28 = scalar_lea.vmem [#allocation2], %s3591_s5  ;;  %s4153_s9 = scalar_lea.sflag [#allocation3], %s148_s30 }
  0x33   : > { %s159_s22 = sshll.u32 %s152_s28, 4  ;;  %s3914_s10 = scalar_lea.hbm %s4149_s29, 4096  ;;  %s4151_s22 = int_to_ptr.vmem [resolvable:$true] %s159_s22 }
  0x34   : > { %p3915_p5 = scmp.ne.s32.totalorder %s4149_s29, %s3914_s10  ;;  %p3916_p6 = pneg %p4141_p3 }
  0x35   : > { %s3919_s20 = scalar_lea.hbm %s4997_s0, 16384  ;;  %p3920_p13 = scmp.lt.u32.totalorder %s4149_s29, %s4997_s0 }
  0x36   : > { %p3917_p11 = pnand %p3916_p6, %p3915_p5  ;;  %p3921_p2 = scmp.lt.u32.totalorder %s3919_s20, %s3914_s10 }
  0x37   : > { %p3923_p8 = scmp.lt.u32.totalorder %s3914_s10, %s4149_s29 }
  0x38   : > { %p3918_p12 = pneg %p3917_p11  ;;  %p3922_p7 = por %p3921_p2, %p3920_p13 }
  0x3a   : > { %p3924_p9 = por %p3923_p8, %p3922_p7 }
  0x3c   : > { %p3925_p10 = pnand %p3924_p9, %p3918_p12 }
  0x3e   : > { %3928 = shalt.err (!%p3925_p10)
}
  0x3f   : > { %s3929_s30 = scalar_lea.vmem %s4151_s22, 4096  ;;  %s4019_s5 = smov [#allocation2]  }
  0x40   : > { %p3930_p1 = scmp.ne.s32.totalorder %s4151_s22, %s3929_s30  ;;  %s3934_s7 = sshll.u32 %s4019_s5, 4  ;;  %s3935_s7 = int_to_ptr.vmem [resolvable:$false] %s3934_s7 }
  0x41   : > { %s3936_s8 = scalar_lea.vmem %s3935_s7, 8192  ;;  %p3937_p5 = scmp.lt.s32.totalorder %s4151_s22, %s3935_s7 }
  0x42   : > { %p3932_p4 = pnand %p3930_p1, %p3916_p6  ;;  %p3938_p11 = scmp.lt.s32.totalorder %s3936_s8, %s3929_s30 }
  0x44   : > { %p3933_p0 = pneg %p3932_p4  ;;  %p3939_p13 = por %p3938_p11, %p3937_p5 }
  0x46   : > { %p3940_p2 = pnand %p3939_p13, %p3933_p0 }
  0x48   : > { %3943 = shalt.err (!%p3940_p2)
}
  0x49   : > { %s4020_s28 = smov 8192   ;;  %s4021_s10 = smov 2048  }
  0x4a   : > { %3772 = dma.hbm_to_vmem [thread:$0]  (!%p4141_p3), %s4149_s29, 4096, %s4151_s22, %s4153_s9, %s4020_s28, %s4021_s10, %s4017_s17  }
  0x4b   : > { %p5014_p6 = scmp.ne.s32.totalorder %s5009_s26, 0 }
  0x4c   : > { %s4185_s11 = sand.u32 (!%p5014_p6), 1, %s4006_s13   ;;  %p5015_p12 = scmp.ne.s32.totalorder (!%p5014_p6), %s5006_s23, 0 }
  0x4d   : > { %171 = sbr.rel (%p5014_p6) target bundleno = 1344 (0x540), region = 32  ;;  %s3595_s19 = sshll.u32 (!%p5014_p6), %s4185_s11, 8 }
  0x4e   : > { %s174_s20 = scalar_lea.sflag (!%p5014_p6), [#allocation3], %s4185_s11  ;;  %s4189_s27 = scalar_lea.vmem (!%p5014_p6), [#allocation2], %s3595_s19 }
  0x54   : > { %3989 = dma.done.wait (%p5015_p12), %s174_s20, 4096  }
  0x55   : > { %3991 = vsyncadd (%p5015_p12), %s174_s20, 4294963200  ;;  %p5016_p3 = scmp.eq.s32.totalorder %s4066_s16, 0 }
  0x57   : > { %3993 = dma.done.wait (%p5016_p3), [#allocation6], 2688   ;;  %p5017_p7 = pmov %p5016_p3 }
  0x58   : > { %vm292_vm0 = vcmask 1043456   ;;  %v4022_v0 = vmov 0   ;;  %vm293_vm1 = vcmask 1044480   ;;  %v4023_v1 = vmov 65535   ;;  %v208_v3 = vld [vmem:[%s4189_s27 + $0x8] sm:$0xff]  ;;  %v210_v6 = vld [vmem:[%s4189_s27 + $0x18] sm:$0xff] }
  0x59   : > { %3995 = vsyncadd (%p5017_p7), [#allocation6], 4294964608  ;;  %376 = vmatprep.mubr.bf16.mxu0 %v4022_v0  ;;  %429 = vmatprep.mubr.bf16.mxu1 %v4022_v0  ;;  %v294_v2 = vsel %vm292_vm0, 4294967295, %v4023_v1  ;;  %v224_v4 = vld [vmem:[%s4189_s27 + $0x88] sm:$0x1]  ;;  %v207_v9 = vld [vmem:[%s4189_s27] sm:$0xff] }
  0x5a   : > { %3820 = vset.pattern.permute.xlu0 %v4022_v0  ;;  %3821 = vset.pattern.permute.xlu1 %v4022_v0  ;;  %v4205_v5 = vsel %vm293_vm1, %v294_v2, 0  ;;  %v240_v7 = vpack.c.bf16 %v224_v4, %v208_v3  ;;  %v226_v8 = vld [vmem:[%s4189_s27 + $0x98] sm:$0x1]  ;;  %v223_v10 = vld [vmem:[%s4189_s27 + $0x80] sm:$0x1]  ;;  %v209_v13 = vld [vmem:[%s4189_s27 + $0x10] sm:$0xff] }
  0x5b   : > { %v242_v11 = vpack.c.bf16 %v226_v8, %v210_v6  ;;  %v239_v12 = vpack.c.bf16 %v223_v10, %v207_v9  ;;  %v225_v14 = vld [vmem:[%s4189_s27 + $0x90] sm:$0x1]  ;;  %v255_v15 = vld [vmem:[#allocation5] sm:$0xff]  ;;  %v256_v18 = vld [vmem:[#allocation5 + $0x8] sm:$0xff]  ;;  %vm285_vm2 = vcmask 72704   ;;  %vm894_vm3 = vcmask 261120  }
  0x5c   : > { %v4214_v16 = vand.u32 %v4205_v5, %v240_v7  ;;  %v241_v17 = vpack.c.bf16 %v225_v14, %v209_v13  ;;  %v212_v19 = vld [vmem:[%s4189_s27 + $0x28] sm:$0xff]  ;;  %v214_v24 = vld [vmem:[%s4189_s27 + $0x38] sm:$0xff]  ;;  %v211_v26 = vld [vmem:[%s4189_s27 + $0x20] sm:$0xff]  ;;  %v4231_v28 = vpack.c.bf16 %v256_v18, %v255_v15  ;;  %s3597_s26 = sshll.u32 %s4185_s11, 6  ;;  %s3692_s4 = sshll.u32 %s4066_s16, 10 }
  0x5d   : > { %v228_v20 = vld [vmem:[%s4189_s27 + $0xa8] sm:$0x1]  ;;  %v4219_v21 = vand.u32 %v4205_v5, %v242_v11  ;;  %v4222_v22 = vand.u32 %v4205_v5, %v239_v12  ;;  %v230_v25 = vld [vmem:[%s4189_s27 + $0xb8] sm:$0x1]  ;;  %v227_v30 = vld [vmem:[%s4189_s27 + $0xa0] sm:$0x1]  ;;  %s4952_s6 = scalar_lea.hbm %s5000_s3, %s3692_s4 }
  0x5e   : > { %v244_v23 = vpack.c.bf16 %v228_v20, %v212_v19  ;;  %344 = vmatprep.subr.bf16.mxu0 %v4214_v16  ;;  %v4229_v27 = vand.u32 %v4205_v5, %v241_v17  ;;  %v246_v29 = vpack.c.bf16 %v230_v25, %v214_v24  ;;  %v213_v31 = vld [vmem:[%s4189_s27 + $0x30] sm:$0xff]  ;;  %v243_v34 = vpack.c.bf16 %v227_v30, %v211_v26  ;;  %v216_v36 = vld [vmem:[%s4189_s27 + $0x48] sm:$0xff]  ;;  %v218_v39 = vld [vmem:[%s4189_s27 + $0x58] sm:$0xff]  ;;  %s4934_s17 = scalar_lea.vmem [#allocation7], %s3597_s26  ;;  %p5018_p9 = scmp.ne.s32.totalorder %s5007_s24, 0 }
  0x5f   : > { %v229_v32 = vld [vmem:[%s4189_s27 + $0xb0] sm:$0x1]  ;;  %397 = vmatprep.subr.bf16.mxu1 %v4219_v21  ;;  %345 = vmatpush1.bf16.msra.mxu0 %v4222_v22  ;;  %v232_v38 = vld [vmem:[%s4189_s27 + $0xc8] sm:$0x1]  ;;  %v234_v40 = vld [vmem:[%s4189_s27 + $0xd8] sm:$0x1] }
  0x60   : > { %v4239_v33 = vand.u32 %v4205_v5, %v244_v23  ;;  %v245_v35 = vpack.c.bf16 %v229_v32, %v213_v31  ;;  %398 = vmatpush1.bf16.msra.mxu1 %v4229_v27  ;;  %v4244_v37 = vand.u32 %v4205_v5, %v246_v29  ;;  %v4251_v41 = vand.u32 %v4205_v5, %v243_v34  ;;  %v257_v45 = vld [vmem:[#allocation5 + $0x10] sm:$0xff]  ;;  %v258_v46 = vld [vmem:[#allocation5 + $0x18] sm:$0xff]  ;;  %v261_v49 = vld [vmem:[%s4999_s2] sm:$0xff]  ;;  %s3507_s29 = sshll.u32 %s4934_s17, 4  ;;  %s4024_s16 = smov [#allocation7]   ;;  %s4954_s29 = int_to_ptr.vmem [resolvable:$true] %s3507_s29 }
  0x61   : > { %v248_v43 = vpack.c.bf16 %v232_v38, %v216_v36  ;;  %v250_v44 = vpack.c.bf16 %v234_v40, %v218_v39  ;;  %v4275_v50 = vpack.c.bf16 %v258_v46, %v257_v45  ;;  %267 = vperm.xlu0 %3820, %v261_v49   ;;  %v263_v51 = vld [vmem:[%s4999_s2 + $0x10] sm:$0xff]  ;;  %v262_v52 = vld [vmem:[%s4999_s2 + $0x8] sm:$0xff]  ;;  %v215_v53 = vld [vmem:[%s4189_s27 + $0x40] sm:$0xff]  ;;  %s3944_s30 = scalar_lea.vmem %s4954_s29, 1024  ;;  %s3948_s5 = sshll.u32 %s4024_s16, 4  ;;  %s3949_s5 = int_to_ptr.vmem [resolvable:$false] %s3948_s5 }
  0x62   : > { %450 = vmatprep.subr.bf16.mxu0 %v4239_v33  ;;  %v4254_v42 = vand.u32 %v4205_v5, %v245_v35  ;;  %3598 = vmatmul.mubr.msk.bf16.vlgmr.msra.gmra.mrb[0].mxu0 %vm285_vm2, %v4231_v28  ;;  %v231_v54 = vld [vmem:[%s4189_s27 + $0xc0] sm:$0x1]  ;;  %v217_v55 = vld [vmem:[%s4189_s27 + $0x50] sm:$0xff]  ;;  %v264_v57 = vld [vmem:[%s4999_s2 + $0x18] sm:$0xff]  ;;  %p3945_p8 = scmp.ne.s32.totalorder %s4954_s29, %s3944_s30  ;;  %s3950_s7 = scalar_lea.vmem %s3949_s5, 2048 }
  0x63   : > { %503 = vmatprep.subr.bf16.mxu1 %v4244_v37  ;;  %3600 = vmatmul.mubr.msk.bf16.vlgmr.msra.gmra.mrb[0].mxu1 %vm285_vm2, %v4231_v28  ;;  %v4263_v47 = vand.u32 %v4205_v5, %v248_v43  ;;  %v4266_v48 = vand.u32 %v4205_v5, %v250_v44  ;;  %v233_v56 = vld [vmem:[%s4189_s27 + $0xd0] sm:$0x1]  ;;  %v220_v58 = vld [vmem:[%s4189_s27 + $0x68] sm:$0xff]  ;;  %v247_v60 = vpack.c.bf16 %v231_v54, %v215_v53  ;;  %v222_v61 = vld [vmem:[%s4189_s27 + $0x78] sm:$0xff]  ;;  %p3951_p4 = scmp.lt.s32.totalorder %s4954_s29, %s3949_s5  ;;  %p3952_p0 = scmp.lt.s32.totalorder %s3950_s7, %s3944_s30 }
  0x64   : > { %451 = vmatpush1.bf16.msra.mxu0 %v4251_v41  ;;  %504 = vmatpush1.bf16.msra.mxu1 %v4254_v42  ;;  %v236_v59 = vld [vmem:[%s4189_s27 + $0xe8] sm:$0x1]  ;;  %v238_v62 = vld [vmem:[%s4189_s27 + $0xf8] sm:$0x1]  ;;  %v870_v63 = vld [vmem:[%s4999_s2 + $0x20] sm:$0xff]  ;;  %v249_v1 = vpack.c.bf16 %v233_v56, %v217_v55  ;;  %p3946_p10 = pnand %p3945_p8, %p5018_p9 }
  0x65   : > { %386 = vmatprep.mubr.bf16.mxu0 %v4022_v0  ;;  %439 = vmatprep.mubr.bf16.mxu1 %v4022_v0  ;;  %v252_v2 = vpack.c.bf16 %v236_v59, %v220_v58  ;;  %v871_v3 = vld [vmem:[%s4999_s2 + $0x28] sm:$0xff]  ;;  %v254_v4 = vpack.c.bf16 %v238_v62, %v222_v61  ;;  %v4308_v6 = vand.u32 %v4205_v5, %v247_v60  ;;  %v872_v7 = vld [vmem:[%s4999_s2 + $0x30] sm:$0xff]  ;;  %v2293_v11 = vld [vmem:[%s4999_s2 + $0x40] sm:$0xff]  ;;  %p3953_p5 = por %p3952_p0, %p3951_p4 }
  0x66   : > { %556 = vmatprep.subr.bf16.mxu0 %v4263_v47  ;;  %609 = vmatprep.subr.bf16.mxu1 %v4266_v48  ;;  %v4314_v8 = vand.u32 %v4205_v5, %v249_v1  ;;  %v873_v12 = vld [vmem:[%s4999_s2 + $0x38] sm:$0xff]  ;;  %v2295_v13 = vld [vmem:[%s4999_s2 + $0x50] sm:$0xff]  ;;  %v219_v14 = vld [vmem:[%s4189_s27 + $0x60] sm:$0xff]  ;;  %p3947_p1 = pneg %p3946_p10 }
  0x67   : > { %277 = vperm.xlu1 %3821, %v263_v51   ;;  %272 = vperm.xlu0 %3820, %v262_v52   ;;  %v4317_v9 = vand.u32 %v4205_v5, %v252_v2  ;;  %v4322_v10 = vand.u32 %v4205_v5, %v254_v4  ;;  %v235_v15 = vld [vmem:[%s4189_s27 + $0xe0] sm:$0x1]  ;;  %v221_v17 = vld [vmem:[%s4189_s27 + $0x70] sm:$0xff]  ;;  %v2294_v19 = vld [vmem:[%s4999_s2 + $0x48] sm:$0xff] }
  0x68   : > { %v237_v18 = vld [vmem:[%s4189_s27 + $0xf0] sm:$0x1]  ;;  %v251_v20 = vpack.c.bf16 %v235_v15, %v219_v14  ;;  %v2483_v23 = vld [vmem:[%s4999_s2 + $0x60] sm:$0xff]  ;;  %v2296_v25 = vld [vmem:[%s4999_s2 + $0x58] sm:$0xff]  ;;  %s3493_s27 = scalar_lea.sflag [#allocation4], %s4185_s11  ;;  %p3954_p11 = pnand %p3953_p5, %p3947_p1 }
  0x69   : > { %v253_v24 = vpack.c.bf16 %v237_v18, %v221_v17  ;;  %v2485_v29 = vld [vmem:[%s4999_s2 + $0x70] sm:$0xff]  ;;  %v2484_v31 = vld [vmem:[%s4999_s2 + $0x68] sm:$0xff]  ;;  %v3035_v32 = vld [vmem:[%s4999_s2 + $0x80] sm:$0x7] }
  0x6a   : > { %3599 = vmatmul.mubr.msk.bf16.gmra.mrb[4].mxu0 %vm285_vm2, %v4275_v50  ;;  %v4361_v26 = vand.u32 %v4205_v5, %v251_v20 }
  0x6b   : > { %3601 = vmatmul.mubr.msk.bf16.gmra.mrb[4].mxu1 %vm285_vm2, %v4275_v50  ;;  %482 = vmatprep.mubr.bf16.mxu0 %v4022_v0  ;;  %v4367_v30 = vand.u32 %v4205_v5, %v253_v24  ;;  %v2486_v5 = vld [vmem:[%s4999_s2 + $0x78] sm:$0xff] }
  0x6c   : > { %535 = vmatprep.mubr.bf16.mxu1 %v4022_v0  ;;  %282 = vperm.xlu1 %3821, %v264_v57  }
  0x6d   : > { %876 = vperm.xlu0 %3820, %v870_v63  }
  0x70   : > { %881 = vperm.xlu1 %3821, %v871_v3  }
  0x71   : > { %886 = vperm.xlu0 %3820, %v872_v7  }
  0x72   : > { %3602 = vmatmul.mubr.msk.bf16.vlgmr.msra.gmra.mrb[8].mxu0 %vm285_vm2, %v4231_v28 }
  0x73   : > { %3604 = vmatmul.mubr.msk.bf16.vlgmr.msra.gmra.mrb[8].mxu1 %vm285_vm2, %v4231_v28  ;;  %557 = vmatpush1.bf16.msra.mxu0 %v4308_v6 }
  0x74   : > { %610 = vmatpush1.bf16.msra.mxu1 %v4314_v8  ;;  %492 = vmatprep.mubr.bf16.mxu0 %v4022_v0 }
  0x75   : > { %545 = vmatprep.mubr.bf16.mxu1 %v4022_v0  ;;  %662 = vmatprep.subr.bf16.mxu0 %v4317_v9 }
  0x76   : > { %715 = vmatprep.subr.bf16.mxu1 %v4322_v10  ;;  %2299 = vperm.xlu0 %3820, %v2293_v11  }
  0x77   : > { %891 = vperm.xlu1 %3821, %v873_v12  }
  0x7a   : > { %3603 = vmatmul.mubr.msk.bf16.gmra.mrb[12].mxu0 %vm285_vm2, %v4275_v50  ;;  %2309 = vperm.xlu0 %3820, %v2295_v13  }
  0x7b   : > { %3605 = vmatmul.mubr.msk.bf16.gmra.mrb[12].mxu1 %vm285_vm2, %v4275_v50  ;;  %588 = vmatprep.mubr.bf16.mxu0 %v4022_v0 }
  0x7c   : > { %641 = vmatprep.mubr.bf16.mxu1 %v4022_v0  ;;  %2304 = vperm.xlu1 %3821, %v2294_v19  }
  0x7e   : > { %2489 = vperm.xlu0 %3820, %v2483_v23  }
  0x80   : > { %2314 = vperm.xlu1 %3821, %v2296_v25  }
  0x82   : > { %3606 = vmatmul.mubr.msk.bf16.vlgmr.msra.gmra.mrb[16].mxu0 %vm285_vm2, %v4231_v28  ;;  %2499 = vperm.xlu0 %3820, %v2485_v29  }
  0x83   : > { %3608 = vmatmul.mubr.msk.bf16.vlgmr.msra.gmra.mrb[16].mxu1 %vm285_vm2, %v4231_v28  ;;  %663 = vmatpush1.bf16.msra.mxu0 %v4361_v26 }
  0x84   : > { %716 = vmatpush1.bf16.msra.mxu1 %v4367_v30  ;;  %598 = vmatprep.mubr.bf16.mxu0 %v4022_v0 }
  0x85   : > { %651 = vmatprep.mubr.bf16.mxu1 %v4022_v0  ;;  %2494 = vperm.xlu1 %3821, %v2484_v31  }
  0x86   : > { %3038 = vperm.xlu0 %3820, %v3035_v32  }
  0x89   : > { %2504 = vperm.xlu1 %3821, %v2486_v5  }
  0x8a   : > { %3607 = vmatmul.mubr.msk.bf16.gmra.mrb[20].mxu0 %vm285_vm2, %v4275_v50 }
  0x8b   : > { %3609 = vmatmul.mubr.msk.bf16.gmra.mrb[20].mxu1 %vm285_vm2, %v4275_v50  ;;  %694 = vmatprep.mubr.bf16.mxu0 %v4022_v0 }
  0x8c   : > { %747 = vmatprep.mubr.bf16.mxu1 %v4022_v0 }
  0x92   : > { %3610 = vmatmul.mubr.msk.bf16.vlgmr.msra.gmra.mrb[24].mxu0 %vm285_vm2, %v4231_v28 }
  0x93   : > { %3612 = vmatmul.mubr.msk.bf16.vlgmr.msra.gmra.mrb[24].mxu1 %vm285_vm2, %v4231_v28  ;;  %704 = vmatprep.mubr.bf16.mxu0 %v4022_v0 }
  0x94   : > { %757 = vmatprep.mubr.bf16.mxu1 %v4022_v0 }
  0x9a   : > { %3611 = vmatmul.mubr.msk.bf16.gmra.mrb[28].mxu0 %vm285_vm2, %v4275_v50 }
  0x9b   : > { %3613 = vmatmul.mubr.msk.bf16.gmra.mrb[28].mxu1 %vm285_vm2, %v4275_v50  ;;  %933 = vmatprep.mubr.bf16.mxu0 %v4022_v0 }
  0x9c   : > { %986 = vmatprep.mubr.bf16.mxu1 %v4022_v0 }
  0xe0   : > { %v4404_v34 = vpop.permute.xlu0 %267 }
  0xe6   : > { %v4406_v35 = vpop.permute.xlu1 %277  ;;  %v4408_v36 = vpop.permute.xlu0 %272 }
  0xeb   : > { %v4418_v3 = vpop.permute.xlu1 %282 }
 0x135   : > { %v378_v28 = vpop.f32.mrb[0].mxu0 }
 0x136   : > { %v379_v38 = vadd.f32 %v378_v28, %v4404_v34  ;;  %v431_v39 = vpop.f32.mrb[0].mxu1  ;;  %v380_v40 = vpop.f32.mrb[1].mxu0 }
 0x137   : > { %v432_v43 = vadd.f32 %v431_v39, %v4404_v34  ;;  %v381_v44 = vadd.f32 %v380_v40, %v4404_v34  ;;  %v433_v45 = vpop.f32.mrb[1].mxu1  ;;  %v382_v46 = vpop.f32.mrb[2].mxu0 }
 0x138   : > { %v434_v49 = vadd.f32 %v433_v45, %v4404_v34  ;;  %v383_v50 = vadd.f32 %v382_v46, %v4408_v36  ;;  %v435_v51 = vpop.f32.mrb[2].mxu1  ;;  %v384_v52 = vpop.f32.mrb[3].mxu0  ;;  %v768_v56 = vmax.f32 %v379_v38, 0.0 }
 0x139   : > { %v436_v53 = vadd.f32 %v435_v51, %v4408_v36  ;;  %v385_v54 = vadd.f32 %v384_v52, %v4408_v36  ;;  %v437_v55 = vpop.f32.mrb[3].mxu1  ;;  %v770_v59 = vmax.f32 %v432_v43, 0.0  ;;  %v769_v60 = vmax.f32 %v381_v44, 0.0  ;;  %v864_v51 = vld [vmem:[#allocation5 + $0x20] sm:$0xff]  ;;  %v865_v52 = vld [vmem:[#allocation5 + $0x28] sm:$0xff] }
 0x13a   : > { %v784_v57 = vmax.f32 %v383_v50, 0.0  ;;  %v438_v58 = vadd.f32 %v437_v55, %v4408_v36  ;;  %v771_v63 = vmax.f32 %v434_v49, 0.0 }
 0x13b   : > { %v786_v61 = vmax.f32 %v436_v53, 0.0  ;;  %v785_v62 = vmax.f32 %v385_v54, 0.0 }
 0x13c   : > { %v832_v1 = vpack.c.bf16 %v784_v57, %v768_v56  ;;  %v787_v2 = vmax.f32 %v438_v58, 0.0 }
 0x13d   : > { %v834_v4 = vpack.c.bf16 %v786_v61, %v770_v59  ;;  %v833_v7 = vpack.c.bf16 %v785_v62, %v769_v60  ;;  %v388_v11 = vpop.f32.mrb[4].mxu0 }
 0x13e   : > { %v835_v12 = vpack.c.bf16 %v787_v2, %v771_v63  ;;  %v389_v13 = vadd.f32 %v388_v11, %v4406_v35  ;;  %v441_v14 = vpop.f32.mrb[4].mxu1  ;;  %v390_v15 = vpop.f32.mrb[5].mxu0 }
 0x13f   : > { %v442_v17 = vadd.f32 %v441_v14, %v4406_v35  ;;  %v391_v18 = vadd.f32 %v390_v15, %v4406_v35  ;;  %v443_v19 = vpop.f32.mrb[5].mxu1  ;;  %v392_v20 = vpop.f32.mrb[6].mxu0  ;;  %901 = vmatprep.subr.bf16.mxu0 %v833_v7 }
 0x140   : > { %v444_v23 = vadd.f32 %v443_v19, %v4406_v35  ;;  %v393_v24 = vadd.f32 %v392_v20, %v4418_v3  ;;  %v445_v25 = vpop.f32.mrb[6].mxu1  ;;  %954 = vmatprep.subr.bf16.mxu1 %v835_v12  ;;  %v394_v29 = vpop.f32.mrb[7].mxu0  ;;  %902 = vmatpush1.bf16.msra.mxu0 %v832_v1  ;;  %v800_v28 = vmax.f32 %v389_v13, 0.0  ;;  %v4431_v1 = vpack.c.bf16 %v865_v52, %v864_v51 }
 0x141   : > { %v446_v31 = vadd.f32 %v445_v25, %v4418_v3  ;;  %v395_v32 = vadd.f32 %v394_v29, %v4418_v3  ;;  %v447_v5 = vpop.f32.mrb[7].mxu1  ;;  %955 = vmatpush1.bf16.msra.mxu1 %v834_v4  ;;  %v802_v40 = vmax.f32 %v442_v17, 0.0  ;;  %v801_v43 = vmax.f32 %v391_v18, 0.0 }
 0x142   : > { %v816_v38 = vmax.f32 %v393_v24, 0.0  ;;  %v448_v39 = vadd.f32 %v447_v5, %v4418_v3  ;;  %v803_v46 = vmax.f32 %v444_v23, 0.0  ;;  %v867_v5 = vld [vmem:[#allocation5 + $0x38] sm:$0xff] }
 0x143   : > { %v818_v44 = vmax.f32 %v446_v31, 0.0  ;;  %v817_v45 = vmax.f32 %v395_v32, 0.0  ;;  %v866_v32 = vld [vmem:[#allocation5 + $0x30] sm:$0xff] }
 0x144   : > { %v848_v49 = vpack.c.bf16 %v816_v38, %v800_v28  ;;  %v819_v50 = vmax.f32 %v448_v39, 0.0  ;;  %v4447_v52 = vpack.c.bf16 %v867_v5, %v866_v32 }
 0x145   : > { %v850_v53 = vpack.c.bf16 %v818_v44, %v802_v40  ;;  %v849_v54 = vpack.c.bf16 %v817_v45, %v801_v43  ;;  %v484_v55 = vpop.f32.mrb[8].mxu0 }
 0x146   : > { %v851_v56 = vpack.c.bf16 %v819_v50, %v803_v46  ;;  %v485_v57 = vadd.f32 %v484_v55, %v4404_v34  ;;  %v537_v58 = vpop.f32.mrb[8].mxu1  ;;  %v486_v59 = vpop.f32.mrb[9].mxu0 }
 0x147   : > { %v538_v60 = vadd.f32 %v537_v58, %v4404_v34  ;;  %v487_v61 = vadd.f32 %v486_v59, %v4404_v34  ;;  %v539_v62 = vpop.f32.mrb[9].mxu1  ;;  %v488_v63 = vpop.f32.mrb[10].mxu0  ;;  %903 = vmatprep.subr.bf16.mxu0 %v849_v54 }
 0x148   : > { %v540_v2 = vadd.f32 %v539_v62, %v4404_v34  ;;  %v489_v4 = vadd.f32 %v488_v63, %v4408_v36  ;;  %v541_v7 = vpop.f32.mrb[10].mxu1  ;;  %956 = vmatprep.subr.bf16.mxu1 %v851_v56  ;;  %v490_v11 = vpop.f32.mrb[11].mxu0  ;;  %904 = vmatpush1.bf16.msra.mxu0 %v848_v49  ;;  %v772_v15 = vmax.f32 %v485_v57, 0.0 }
 0x149   : > { %v542_v12 = vadd.f32 %v541_v7, %v4408_v36  ;;  %v491_v13 = vadd.f32 %v490_v11, %v4408_v36  ;;  %v543_v14 = vpop.f32.mrb[11].mxu1  ;;  %957 = vmatpush1.bf16.msra.mxu1 %v850_v53  ;;  %v774_v19 = vmax.f32 %v538_v60, 0.0  ;;  %v773_v20 = vmax.f32 %v487_v61, 0.0 }
 0x14a   : > { %v788_v17 = vmax.f32 %v489_v4, 0.0  ;;  %v544_v18 = vadd.f32 %v543_v14, %v4408_v36  ;;  %v775_v25 = vmax.f32 %v540_v2, 0.0 }
 0x14b   : > { %v790_v23 = vmax.f32 %v542_v12, 0.0  ;;  %v789_v24 = vmax.f32 %v491_v13, 0.0  ;;  %3614 = vmatmul.mubr.msk.bf16.vlgmr.msra.gmra.mrb[32].mxu0 %vm894_vm3, %v4431_v1 }
 0x14c   : > { %v836_v29 = vpack.c.bf16 %v788_v17, %v772_v15  ;;  %v791_v31 = vmax.f32 %v544_v18, 0.0  ;;  %3616 = vmatmul.mubr.msk.bf16.vlgmr.msra.gmra.mrb[32].mxu1 %vm894_vm3, %v4431_v1  ;;  %943 = vmatprep.mubr.bf16.mxu0 %v4022_v0 }
 0x14d   : > { %v838_v28 = vpack.c.bf16 %v790_v23, %v774_v19  ;;  %v837_v38 = vpack.c.bf16 %v789_v24, %v773_v20  ;;  %v494_v39 = vpop.f32.mrb[12].mxu0  ;;  %996 = vmatprep.mubr.bf16.mxu1 %v4022_v0 }
 0x14e   : > { %v839_v40 = vpack.c.bf16 %v791_v31, %v775_v25  ;;  %v495_v43 = vadd.f32 %v494_v39, %v4406_v35  ;;  %v547_v44 = vpop.f32.mrb[12].mxu1  ;;  %v496_v45 = vpop.f32.mrb[13].mxu0 }
 0x14f   : > { %v548_v46 = vadd.f32 %v547_v44, %v4406_v35  ;;  %v497_v49 = vadd.f32 %v496_v45, %v4406_v35  ;;  %v549_v50 = vpop.f32.mrb[13].mxu1  ;;  %v498_v51 = vpop.f32.mrb[14].mxu0  ;;  %1007 = vmatprep.subr.bf16.mxu0 %v837_v38 }
 0x150   : > { %v550_v53 = vadd.f32 %v549_v50, %v4406_v35  ;;  %v499_v54 = vadd.f32 %v498_v51, %v4418_v3  ;;  %v551_v55 = vpop.f32.mrb[14].mxu1  ;;  %1060 = vmatprep.subr.bf16.mxu1 %v839_v40  ;;  %v500_v56 = vpop.f32.mrb[15].mxu0  ;;  %1008 = vmatpush1.bf16.msra.mxu0 %v836_v29  ;;  %v804_v60 = vmax.f32 %v495_v43, 0.0 }
 0x151   : > { %v552_v57 = vadd.f32 %v551_v55, %v4418_v3  ;;  %v501_v58 = vadd.f32 %v500_v56, %v4418_v3  ;;  %v553_v59 = vpop.f32.mrb[15].mxu1  ;;  %1061 = vmatpush1.bf16.msra.mxu1 %v838_v28  ;;  %v806_v63 = vmax.f32 %v548_v46, 0.0  ;;  %v805_v2 = vmax.f32 %v497_v49, 0.0 }
 0x152   : > { %v820_v61 = vmax.f32 %v499_v54, 0.0  ;;  %v554_v62 = vadd.f32 %v553_v59, %v4418_v3  ;;  %v807_v11 = vmax.f32 %v550_v53, 0.0 }
 0x153   : > { %v822_v4 = vmax.f32 %v552_v57, 0.0  ;;  %v821_v7 = vmax.f32 %v501_v58, 0.0  ;;  %3615 = vmatmul.mubr.msk.bf16.gmra.mrb[36].mxu0 %vm894_vm3, %v4447_v52 }
 0x154   : > { %v852_v12 = vpack.c.bf16 %v820_v61, %v804_v60  ;;  %v823_v13 = vmax.f32 %v554_v62, 0.0  ;;  %3617 = vmatmul.mubr.msk.bf16.gmra.mrb[36].mxu1 %vm894_vm3, %v4447_v52  ;;  %1039 = vmatprep.mubr.bf16.mxu0 %v4022_v0 }
 0x155   : > { %v854_v14 = vpack.c.bf16 %v822_v4, %v806_v63  ;;  %v853_v15 = vpack.c.bf16 %v821_v7, %v805_v2  ;;  %v590_v17 = vpop.f32.mrb[16].mxu0  ;;  %1092 = vmatprep.mubr.bf16.mxu1 %v4022_v0 }
 0x156   : > { %v855_v18 = vpack.c.bf16 %v823_v13, %v807_v11  ;;  %v591_v19 = vadd.f32 %v590_v17, %v4404_v34  ;;  %v643_v20 = vpop.f32.mrb[16].mxu1  ;;  %v592_v23 = vpop.f32.mrb[17].mxu0 }
 0x157   : > { %v644_v24 = vadd.f32 %v643_v20, %v4404_v34  ;;  %v593_v25 = vadd.f32 %v592_v23, %v4404_v34  ;;  %v645_v29 = vpop.f32.mrb[17].mxu1  ;;  %v594_v31 = vpop.f32.mrb[18].mxu0  ;;  %1009 = vmatprep.subr.bf16.mxu0 %v853_v15 }
 0x158   : > { %v646_v32 = vadd.f32 %v645_v29, %v4404_v34  ;;  %v595_v5 = vadd.f32 %v594_v31, %v4408_v36  ;;  %v647_v28 = vpop.f32.mrb[18].mxu1  ;;  %1062 = vmatprep.subr.bf16.mxu1 %v855_v18  ;;  %v596_v38 = vpop.f32.mrb[19].mxu0  ;;  %1010 = vmatpush1.bf16.msra.mxu0 %v852_v12  ;;  %v776_v44 = vmax.f32 %v591_v19, 0.0 }
 0x159   : > { %v648_v39 = vadd.f32 %v647_v28, %v4408_v36  ;;  %v597_v40 = vadd.f32 %v596_v38, %v4408_v36  ;;  %v649_v43 = vpop.f32.mrb[19].mxu1  ;;  %1063 = vmatpush1.bf16.msra.mxu1 %v854_v14  ;;  %v778_v49 = vmax.f32 %v644_v24, 0.0  ;;  %v777_v50 = vmax.f32 %v593_v25, 0.0 }
 0x15a   : > { %v792_v45 = vmax.f32 %v595_v5, 0.0  ;;  %v650_v46 = vadd.f32 %v649_v43, %v4408_v36  ;;  %v779_v54 = vmax.f32 %v646_v32, 0.0 }
 0x15b   : > { %v794_v51 = vmax.f32 %v648_v39, 0.0  ;;  %v793_v53 = vmax.f32 %v597_v40, 0.0  ;;  %3618 = vmatmul.mubr.msk.bf16.vlgmr.msra.gmra.mrb[40].mxu0 %vm894_vm3, %v4431_v1 }
 0x15c   : > { %v840_v55 = vpack.c.bf16 %v792_v45, %v776_v44  ;;  %v795_v56 = vmax.f32 %v650_v46, 0.0  ;;  %3620 = vmatmul.mubr.msk.bf16.vlgmr.msra.gmra.mrb[40].mxu1 %vm894_vm3, %v4431_v1  ;;  %1049 = vmatprep.mubr.bf16.mxu0 %v4022_v0 }
 0x15d   : > { %v842_v57 = vpack.c.bf16 %v794_v51, %v778_v49  ;;  %v841_v58 = vpack.c.bf16 %v793_v53, %v777_v50  ;;  %v600_v59 = vpop.f32.mrb[20].mxu0  ;;  %1102 = vmatprep.mubr.bf16.mxu1 %v4022_v0 }
 0x15e   : > { %v843_v60 = vpack.c.bf16 %v795_v56, %v779_v54  ;;  %v601_v61 = vadd.f32 %v600_v59, %v4406_v35  ;;  %v653_v62 = vpop.f32.mrb[20].mxu1  ;;  %v602_v63 = vpop.f32.mrb[21].mxu0 }
 0x15f   : > { %v654_v2 = vadd.f32 %v653_v62, %v4406_v35  ;;  %v603_v4 = vadd.f32 %v602_v63, %v4406_v35  ;;  %v655_v7 = vpop.f32.mrb[21].mxu1  ;;  %v604_v11 = vpop.f32.mrb[22].mxu0  ;;  %1113 = vmatprep.subr.bf16.mxu0 %v841_v58 }
 0x160   : > { %v656_v12 = vadd.f32 %v655_v7, %v4406_v35  ;;  %v605_v13 = vadd.f32 %v604_v11, %v4418_v3  ;;  %v657_v14 = vpop.f32.mrb[22].mxu1  ;;  %1166 = vmatprep.subr.bf16.mxu1 %v843_v60  ;;  %v606_v15 = vpop.f32.mrb[23].mxu0  ;;  %1114 = vmatpush1.bf16.msra.mxu0 %v840_v55  ;;  %v808_v20 = vmax.f32 %v601_v61, 0.0 }
 0x161   : > { %v658_v17 = vadd.f32 %v657_v14, %v4418_v3  ;;  %v607_v18 = vadd.f32 %v606_v15, %v4418_v3  ;;  %v659_v19 = vpop.f32.mrb[23].mxu1  ;;  %1167 = vmatpush1.bf16.msra.mxu1 %v842_v57  ;;  %v810_v25 = vmax.f32 %v654_v2, 0.0  ;;  %v809_v29 = vmax.f32 %v603_v4, 0.0 }
 0x162   : > { %v824_v23 = vmax.f32 %v605_v13, 0.0  ;;  %v660_v24 = vadd.f32 %v659_v19, %v4418_v3  ;;  %v811_v5 = vmax.f32 %v656_v12, 0.0 }
 0x163   : > { %v826_v31 = vmax.f32 %v658_v17, 0.0  ;;  %v825_v32 = vmax.f32 %v607_v18, 0.0  ;;  %3619 = vmatmul.mubr.msk.bf16.gmra.mrb[44].mxu0 %vm894_vm3, %v4447_v52 }
 0x164   : > { %v856_v28 = vpack.c.bf16 %v824_v23, %v808_v20  ;;  %v827_v38 = vmax.f32 %v660_v24, 0.0  ;;  %3621 = vmatmul.mubr.msk.bf16.gmra.mrb[44].mxu1 %vm894_vm3, %v4447_v52  ;;  %1145 = vmatprep.mubr.bf16.mxu0 %v4022_v0 }
 0x165   : > { %v858_v39 = vpack.c.bf16 %v826_v31, %v810_v25  ;;  %v857_v40 = vpack.c.bf16 %v825_v32, %v809_v29  ;;  %v696_v43 = vpop.f32.mrb[24].mxu0  ;;  %1198 = vmatprep.mubr.bf16.mxu1 %v4022_v0 }
 0x166   : > { %v859_v44 = vpack.c.bf16 %v827_v38, %v811_v5  ;;  %v697_v45 = vadd.f32 %v696_v43, %v4404_v34  ;;  %v749_v46 = vpop.f32.mrb[24].mxu1  ;;  %v698_v49 = vpop.f32.mrb[25].mxu0 }
 0x167   : > { %v750_v50 = vadd.f32 %v749_v46, %v4404_v34  ;;  %v699_v51 = vadd.f32 %v698_v49, %v4404_v34  ;;  %v751_v53 = vpop.f32.mrb[25].mxu1  ;;  %v700_v54 = vpop.f32.mrb[26].mxu0  ;;  %1115 = vmatprep.subr.bf16.mxu0 %v857_v40 }
 0x168   : > { %v752_v55 = vadd.f32 %v751_v53, %v4404_v34  ;;  %v701_v56 = vadd.f32 %v700_v54, %v4408_v36  ;;  %v753_v57 = vpop.f32.mrb[26].mxu1  ;;  %1168 = vmatprep.subr.bf16.mxu1 %v859_v44  ;;  %v702_v58 = vpop.f32.mrb[27].mxu0  ;;  %1116 = vmatpush1.bf16.msra.mxu0 %v856_v28  ;;  %v780_v62 = vmax.f32 %v697_v45, 0.0 }
 0x169   : > { %v754_v59 = vadd.f32 %v753_v57, %v4408_v36  ;;  %v703_v60 = vadd.f32 %v702_v58, %v4408_v36  ;;  %v755_v61 = vpop.f32.mrb[27].mxu1  ;;  %1169 = vmatpush1.bf16.msra.mxu1 %v858_v39  ;;  %v782_v4 = vmax.f32 %v750_v50, 0.0  ;;  %v781_v7 = vmax.f32 %v699_v51, 0.0 }
 0x16a   : > { %v796_v63 = vmax.f32 %v701_v56, 0.0  ;;  %v756_v2 = vadd.f32 %v755_v61, %v4408_v36  ;;  %v783_v12 = vmax.f32 %v752_v55, 0.0 }
 0x16b   : > { %v798_v11 = vmax.f32 %v754_v59, 0.0  ;;  %v797_v34 = vmax.f32 %v703_v60, 0.0  ;;  %3622 = vmatmul.mubr.msk.bf16.vlgmr.msra.gmra.mrb[48].mxu0 %vm894_vm3, %v4431_v1 }
 0x16c   : > { %v844_v13 = vpack.c.bf16 %v796_v63, %v780_v62  ;;  %v799_v14 = vmax.f32 %v756_v2, 0.0  ;;  %3624 = vmatmul.mubr.msk.bf16.vlgmr.msra.gmra.mrb[48].mxu1 %vm894_vm3, %v4431_v1  ;;  %1155 = vmatprep.mubr.bf16.mxu0 %v4022_v0 }
 0x16d   : > { %v846_v15 = vpack.c.bf16 %v798_v11, %v782_v4  ;;  %v845_v17 = vpack.c.bf16 %v797_v34, %v781_v7  ;;  %v706_v18 = vpop.f32.mrb[28].mxu0  ;;  %1208 = vmatprep.mubr.bf16.mxu1 %v4022_v0 }
 0x16e   : > { %v847_v36 = vpack.c.bf16 %v799_v14, %v783_v12  ;;  %v707_v19 = vadd.f32 %v706_v18, %v4406_v35  ;;  %v759_v20 = vpop.f32.mrb[28].mxu1  ;;  %v708_v23 = vpop.f32.mrb[29].mxu0 }
 0x16f   : > { %v760_v24 = vadd.f32 %v759_v20, %v4406_v35  ;;  %v709_v25 = vadd.f32 %v708_v23, %v4406_v35  ;;  %v761_v29 = vpop.f32.mrb[29].mxu1  ;;  %v710_v31 = vpop.f32.mrb[30].mxu0  ;;  %1219 = vmatprep.subr.bf16.mxu0 %v845_v17 }
 0x170   : > { %v762_v32 = vadd.f32 %v761_v29, %v4406_v35  ;;  %v711_v5 = vadd.f32 %v710_v31, %v4418_v3  ;;  %v763_v28 = vpop.f32.mrb[30].mxu1  ;;  %1272 = vmatprep.subr.bf16.mxu1 %v847_v36  ;;  %v712_v38 = vpop.f32.mrb[31].mxu0  ;;  %1220 = vmatpush1.bf16.msra.mxu0 %v844_v13  ;;  %v812_v44 = vmax.f32 %v707_v19, 0.0 }
 0x171   : > { %v764_v39 = vadd.f32 %v763_v28, %v4418_v3  ;;  %v713_v40 = vadd.f32 %v712_v38, %v4418_v3  ;;  %v765_v43 = vpop.f32.mrb[31].mxu1  ;;  %1273 = vmatpush1.bf16.msra.mxu1 %v846_v15  ;;  %v814_v49 = vmax.f32 %v760_v24, 0.0  ;;  %v813_v50 = vmax.f32 %v709_v25, 0.0 }
 0x172   : > { %v828_v45 = vmax.f32 %v711_v5, 0.0  ;;  %v766_v46 = vadd.f32 %v765_v43, %v4418_v3  ;;  %v815_v53 = vmax.f32 %v762_v32, 0.0 }
 0x173   : > { %v830_v51 = vmax.f32 %v764_v39, 0.0  ;;  %v829_v35 = vmax.f32 %v713_v40, 0.0  ;;  %3623 = vmatmul.mubr.msk.bf16.gmra.mrb[52].mxu0 %vm894_vm3, %v4447_v52 }
 0x174   : > { %v860_v54 = vpack.c.bf16 %v828_v45, %v812_v44  ;;  %v831_v55 = vmax.f32 %v766_v46, 0.0  ;;  %3625 = vmatmul.mubr.msk.bf16.gmra.mrb[52].mxu1 %vm894_vm3, %v4447_v52  ;;  %1251 = vmatprep.mubr.bf16.mxu0 %v4022_v0 }
 0x175   : > { %v862_v56 = vpack.c.bf16 %v830_v51, %v814_v49  ;;  %v861_v57 = vpack.c.bf16 %v829_v35, %v813_v50  ;;  %1304 = vmatprep.mubr.bf16.mxu1 %v4022_v0 }
 0x176   : > { %v863_v3 = vpack.c.bf16 %v831_v55, %v815_v53 }
 0x177   : > { %1221 = vmatprep.subr.bf16.mxu0 %v861_v57 }
 0x178   : > { %1274 = vmatprep.subr.bf16.mxu1 %v863_v3  ;;  %1222 = vmatpush1.bf16.msra.mxu0 %v860_v54 }
 0x179   : > { %1275 = vmatpush1.bf16.msra.mxu1 %v862_v56  ;;  %1439 = vmatprep.subr.bf16.mxu0 %v4214_v16  ;;  %v1427_v16 = vld [vmem:[#allocation5 + $0x60] sm:$0xff] }
 0x17a   : > { %1492 = vmatprep.subr.bf16.mxu1 %v4219_v21  ;;  %v1428_v21 = vld [vmem:[#allocation5 + $0x68] sm:$0xff] }
 0x17b   : > { %3626 = vmatmul.mubr.msk.bf16.vlgmr.msra.gmra.mrb[56].mxu0 %vm894_vm3, %v4431_v1 }
 0x17c   : > { %3628 = vmatmul.mubr.msk.bf16.vlgmr.msra.gmra.mrb[56].mxu1 %vm894_vm3, %v4431_v1  ;;  %1261 = vmatprep.mubr.bf16.mxu0 %v4022_v0  ;;  %v1431_v1 = vpack.c.bf16 %v1428_v21, %v1427_v16  ;;  %v1421_v16 = vld [vmem:[#allocation5 + $0x40] sm:$0xff]  ;;  %v1422_v21 = vld [vmem:[#allocation5 + $0x48] sm:$0xff] }
 0x17d   : > { %1314 = vmatprep.mubr.bf16.mxu1 %v4022_v0  ;;  %1440 = vmatpush1.bf16.msra.mxu0 %v4222_v22  ;;  %v1429_v22 = vld [vmem:[#allocation5 + $0x70] sm:$0xff] }
 0x17e   : > { %1493 = vmatpush1.bf16.msra.mxu1 %v4229_v27  ;;  %1545 = vmatprep.subr.bf16.mxu0 %v4239_v33  ;;  %v1430_v27 = vld [vmem:[#allocation5 + $0x78] sm:$0xff] }
 0x17f   : > { %1598 = vmatprep.subr.bf16.mxu1 %v4244_v37  ;;  %v1432_v33 = vpack.c.bf16 %v1430_v27, %v1429_v22  ;;  %v4576_v37 = vpop.permute.xlu0 %876 }
 0x183   : > { %3627 = vmatmul.mubr.msk.bf16.gmra.mrb[60].mxu0 %vm894_vm3, %v4447_v52  ;;  %v4588_v13 = vpop.permute.xlu0 %886 }
 0x184   : > { %3629 = vmatmul.mubr.msk.bf16.gmra.mrb[60].mxu1 %vm894_vm3, %v4447_v52  ;;  %1471 = vmatprep.mubr.bf16.mxu0 %v4022_v0 }
 0x185   : > { %1524 = vmatprep.mubr.bf16.mxu1 %v4022_v0 }
 0x18b   : > { %3630 = vmatmul.mubr.msk.bf16.vlgmr.msra.gmra.mrb[64].mxu0 %vm285_vm2, %v1431_v1 }
 0x18c   : > { %3632 = vmatmul.mubr.msk.bf16.vlgmr.msra.gmra.mrb[64].mxu1 %vm285_vm2, %v1431_v1  ;;  %1546 = vmatpush1.bf16.msra.mxu0 %v4251_v41  ;;  %v4578_v41 = vpop.permute.xlu1 %881 }
 0x18d   : > { %1599 = vmatpush1.bf16.msra.mxu1 %v4254_v42  ;;  %1481 = vmatprep.mubr.bf16.mxu0 %v4022_v0 }
 0x18e   : > { %1534 = vmatprep.mubr.bf16.mxu1 %v4022_v0  ;;  %1651 = vmatprep.subr.bf16.mxu0 %v4263_v47 }
 0x18f   : > { %1704 = vmatprep.subr.bf16.mxu1 %v4266_v48 }
 0x190   : > { %v4590_v18 = vpop.permute.xlu1 %891 }
 0x193   : > { %3631 = vmatmul.mubr.msk.bf16.gmra.mrb[68].mxu0 %vm285_vm2, %v1432_v33 }
 0x194   : > { %3633 = vmatmul.mubr.msk.bf16.gmra.mrb[68].mxu1 %vm285_vm2, %v1432_v33  ;;  %1577 = vmatprep.mubr.bf16.mxu0 %v4022_v0 }
 0x195   : > { %1630 = vmatprep.mubr.bf16.mxu1 %v4022_v0 }
 0x19b   : > { %3634 = vmatmul.mubr.msk.bf16.vlgmr.msra.gmra.mrb[72].mxu0 %vm285_vm2, %v1431_v1 }
 0x19c   : > { %3636 = vmatmul.mubr.msk.bf16.vlgmr.msra.gmra.mrb[72].mxu1 %vm285_vm2, %v1431_v1  ;;  %1652 = vmatpush1.bf16.msra.mxu0 %v4308_v6 }
 0x19d   : > { %1705 = vmatpush1.bf16.msra.mxu1 %v4314_v8  ;;  %1587 = vmatprep.mubr.bf16.mxu0 %v4022_v0 }
 0x19e   : > { %1640 = vmatprep.mubr.bf16.mxu1 %v4022_v0  ;;  %1757 = vmatprep.subr.bf16.mxu0 %v4317_v9 }
 0x19f   : > { %1810 = vmatprep.subr.bf16.mxu1 %v4322_v10 }
 0x1a3   : > { %3635 = vmatmul.mubr.msk.bf16.gmra.mrb[76].mxu0 %vm285_vm2, %v1432_v33 }
 0x1a4   : > { %3637 = vmatmul.mubr.msk.bf16.gmra.mrb[76].mxu1 %vm285_vm2, %v1432_v33  ;;  %1683 = vmatprep.mubr.bf16.mxu0 %v4022_v0 }
 0x1a5   : > { %1736 = vmatprep.mubr.bf16.mxu1 %v4022_v0 }
 0x1ab   : > { %3638 = vmatmul.mubr.msk.bf16.vlgmr.msra.gmra.mrb[80].mxu0 %vm285_vm2, %v1431_v1 }
 0x1ac   : > { %3640 = vmatmul.mubr.msk.bf16.vlgmr.msra.gmra.mrb[80].mxu1 %vm285_vm2, %v1431_v1  ;;  %1758 = vmatpush1.bf16.msra.mxu0 %v4361_v26 }
 0x1ad   : > { %1811 = vmatpush1.bf16.msra.mxu1 %v4367_v30  ;;  %1693 = vmatprep.mubr.bf16.mxu0 %v4022_v0 }
 0x1ae   : > { %1746 = vmatprep.mubr.bf16.mxu1 %v4022_v0 }
 0x1b3   : > { %3639 = vmatmul.mubr.msk.bf16.gmra.mrb[84].mxu0 %vm285_vm2, %v1432_v33 }
 0x1b4   : > { %3641 = vmatmul.mubr.msk.bf16.gmra.mrb[84].mxu1 %vm285_vm2, %v1432_v33  ;;  %1789 = vmatprep.mubr.bf16.mxu0 %v4022_v0 }
 0x1b5   : > { %1842 = vmatprep.mubr.bf16.mxu1 %v4022_v0 }
 0x1bb   : > { %3642 = vmatmul.mubr.msk.bf16.vlgmr.msra.gmra.mrb[88].mxu0 %vm285_vm2, %v1431_v1 }
 0x1bc   : > { %3644 = vmatmul.mubr.msk.bf16.vlgmr.msra.gmra.mrb[88].mxu1 %vm285_vm2, %v1431_v1  ;;  %1799 = vmatprep.mubr.bf16.mxu0 %v4022_v0 }
 0x1bd   : > { %1852 = vmatprep.mubr.bf16.mxu1 %v4022_v0 }
 0x1c3   : > { %3643 = vmatmul.mubr.msk.bf16.gmra.mrb[92].mxu0 %vm285_vm2, %v1432_v33 }
 0x1c4   : > { %3645 = vmatmul.mubr.msk.bf16.gmra.mrb[92].mxu1 %vm285_vm2, %v1432_v33  ;;  %1901 = vmatprep.mubr.bf16.mxu0 %v4022_v0 }
 0x1c5   : > { %1954 = vmatprep.mubr.bf16.mxu1 %v4022_v0 }
 0x21e   : > { %v935_v42 = vpop.f32.mrb[32].mxu0 }
 0x21f   : > { %v936_v47 = vadd.f32 %v935_v42, %v4576_v37  ;;  %v988_v48 = vpop.f32.mrb[32].mxu1  ;;  %v937_v6 = vpop.f32.mrb[33].mxu0 }
 0x220   : > { %v989_v8 = vadd.f32 %v988_v48, %v4576_v37  ;;  %v938_v9 = vadd.f32 %v937_v6, %v4576_v37  ;;  %v990_v10 = vpop.f32.mrb[33].mxu1  ;;  %v939_v26 = vpop.f32.mrb[34].mxu0 }
 0x221   : > { %v991_v30 = vadd.f32 %v990_v10, %v4576_v37  ;;  %v940_v52 = vadd.f32 %v939_v26, %v4578_v41  ;;  %v992_v58 = vpop.f32.mrb[34].mxu1  ;;  %v941_v59 = vpop.f32.mrb[35].mxu0  ;;  %v1325_v63 = vmax.f32 %v936_v47, 0.0  ;;  %v4603_v26 = vpack.c.bf16 %v1422_v21, %v1421_v16 }
 0x222   : > { %v993_v60 = vadd.f32 %v992_v58, %v4578_v41  ;;  %v942_v61 = vadd.f32 %v941_v59, %v4578_v41  ;;  %v994_v62 = vpop.f32.mrb[35].mxu1  ;;  %v1327_v7 = vmax.f32 %v989_v8, 0.0  ;;  %v1326_v11 = vmax.f32 %v938_v9, 0.0 }
 0x223   : > { %v1341_v2 = vmax.f32 %v940_v52, 0.0  ;;  %v995_v4 = vadd.f32 %v994_v62, %v4578_v41  ;;  %v1328_v14 = vmax.f32 %v991_v30, 0.0 }
 0x224   : > { %v1343_v34 = vmax.f32 %v993_v60, 0.0  ;;  %v1342_v12 = vmax.f32 %v942_v61, 0.0 }
 0x225   : > { %v1389_v15 = vpack.c.bf16 %v1341_v2, %v1325_v63  ;;  %v1344_v17 = vmax.f32 %v995_v4, 0.0 }
 0x226   : > { %v1391_v36 = vpack.c.bf16 %v1343_v34, %v1327_v7  ;;  %v1390_v19 = vpack.c.bf16 %v1342_v12, %v1326_v11  ;;  %v945_v20 = vpop.f32.mrb[36].mxu0 }
 0x227   : > { %v1392_v23 = vpack.c.bf16 %v1344_v17, %v1328_v14  ;;  %v946_v24 = vadd.f32 %v945_v20, %v4588_v13  ;;  %v998_v25 = vpop.f32.mrb[36].mxu1  ;;  %v947_v29 = vpop.f32.mrb[37].mxu0 }
 0x228   : > { %v999_v31 = vadd.f32 %v998_v25, %v4588_v13  ;;  %v948_v32 = vadd.f32 %v947_v29, %v4588_v13  ;;  %v1000_v5 = vpop.f32.mrb[37].mxu1  ;;  %v949_v28 = vpop.f32.mrb[38].mxu0  ;;  %1869 = vmatprep.subr.bf16.mxu0 %v1390_v19  ;;  %v1424_v19 = vld [vmem:[#allocation5 + $0x58] sm:$0xff] }
 0x229   : > { %v1001_v38 = vadd.f32 %v1000_v5, %v4588_v13  ;;  %v950_v39 = vadd.f32 %v949_v28, %v4590_v18  ;;  %v1002_v40 = vpop.f32.mrb[38].mxu1  ;;  %1922 = vmatprep.subr.bf16.mxu1 %v1392_v23  ;;  %v951_v43 = vpop.f32.mrb[39].mxu0  ;;  %1870 = vmatpush1.bf16.msra.mxu0 %v1389_v15  ;;  %v1357_v49 = vmax.f32 %v946_v24, 0.0 }
 0x22a   : > { %v1003_v44 = vadd.f32 %v1002_v40, %v4590_v18  ;;  %v952_v45 = vadd.f32 %v951_v43, %v4590_v18  ;;  %v1004_v46 = vpop.f32.mrb[39].mxu1  ;;  %1923 = vmatpush1.bf16.msra.mxu1 %v1391_v36  ;;  %v1359_v35 = vmax.f32 %v999_v31, 0.0  ;;  %v1358_v53 = vmax.f32 %v948_v32, 0.0  ;;  %v1423_v36 = vld [vmem:[#allocation5 + $0x50] sm:$0xff] }
 0x22b   : > { %v1373_v50 = vmax.f32 %v950_v39, 0.0  ;;  %v1005_v51 = vadd.f32 %v1004_v46, %v4590_v18  ;;  %v1360_v56 = vmax.f32 %v1001_v38, 0.0  ;;  %v4619_v40 = vpack.c.bf16 %v1424_v19, %v1423_v36 }
 0x22c   : > { %v1375_v54 = vmax.f32 %v1003_v44, 0.0  ;;  %v1374_v55 = vmax.f32 %v952_v45, 0.0 }
 0x22d   : > { %v1405_v57 = vpack.c.bf16 %v1373_v50, %v1357_v49  ;;  %v1376_v3 = vmax.f32 %v1005_v51, 0.0 }
 0x22e   : > { %v1407_v1 = vpack.c.bf16 %v1375_v54, %v1359_v35  ;;  %v1406_v22 = vpack.c.bf16 %v1374_v55, %v1358_v53  ;;  %v1041_v27 = vpop.f32.mrb[40].mxu0 }
 0x22f   : > { %v1408_v33 = vpack.c.bf16 %v1376_v3, %v1360_v56  ;;  %v1042_v42 = vadd.f32 %v1041_v27, %v4576_v37  ;;  %v1094_v47 = vpop.f32.mrb[40].mxu1  ;;  %v1043_v48 = vpop.f32.mrb[41].mxu0 }
 0x230   : > { %v1095_v6 = vadd.f32 %v1094_v47, %v4576_v37  ;;  %v1044_v8 = vadd.f32 %v1043_v48, %v4576_v37  ;;  %v1096_v9 = vpop.f32.mrb[41].mxu1  ;;  %v1045_v10 = vpop.f32.mrb[42].mxu0  ;;  %1871 = vmatprep.subr.bf16.mxu0 %v1406_v22 }
 0x231   : > { %v1097_v30 = vadd.f32 %v1096_v9, %v4576_v37  ;;  %v1046_v52 = vadd.f32 %v1045_v10, %v4578_v41  ;;  %v1098_v58 = vpop.f32.mrb[42].mxu1  ;;  %1924 = vmatprep.subr.bf16.mxu1 %v1408_v33  ;;  %v1047_v59 = vpop.f32.mrb[43].mxu0  ;;  %1872 = vmatpush1.bf16.msra.mxu0 %v1405_v57  ;;  %v1329_v63 = vmax.f32 %v1042_v42, 0.0 }
 0x232   : > { %v1099_v60 = vadd.f32 %v1098_v58, %v4578_v41  ;;  %v1048_v61 = vadd.f32 %v1047_v59, %v4578_v41  ;;  %v1100_v62 = vpop.f32.mrb[43].mxu1  ;;  %1925 = vmatpush1.bf16.msra.mxu1 %v1407_v1  ;;  %v1331_v7 = vmax.f32 %v1095_v6, 0.0  ;;  %v1330_v11 = vmax.f32 %v1044_v8, 0.0 }
 0x233   : > { %v1345_v2 = vmax.f32 %v1046_v52, 0.0  ;;  %v1101_v4 = vadd.f32 %v1100_v62, %v4578_v41  ;;  %v1332_v14 = vmax.f32 %v1097_v30, 0.0 }
 0x234   : > { %v1347_v34 = vmax.f32 %v1099_v60, 0.0  ;;  %v1346_v12 = vmax.f32 %v1048_v61, 0.0  ;;  %3646 = vmatmul.mubr.msk.bf16.vlgmr.msra.gmra.mrb[64].mxu0 %vm894_vm3, %v4603_v26 }
 0x235   : > { %v1393_v15 = vpack.c.bf16 %v1345_v2, %v1329_v63  ;;  %v1348_v17 = vmax.f32 %v1101_v4, 0.0  ;;  %3648 = vmatmul.mubr.msk.bf16.vlgmr.msra.gmra.mrb[64].mxu1 %vm894_vm3, %v4603_v26  ;;  %1911 = vmatprep.mubr.bf16.mxu0 %v4022_v0 }
 0x236   : > { %v1395_v20 = vpack.c.bf16 %v1347_v34, %v1331_v7  ;;  %v1394_v23 = vpack.c.bf16 %v1346_v12, %v1330_v11  ;;  %v1051_v24 = vpop.f32.mrb[44].mxu0  ;;  %1964 = vmatprep.mubr.bf16.mxu1 %v4022_v0 }
 0x237   : > { %v1396_v25 = vpack.c.bf16 %v1348_v17, %v1332_v14  ;;  %v1052_v29 = vadd.f32 %v1051_v24, %v4588_v13  ;;  %v1104_v31 = vpop.f32.mrb[44].mxu1  ;;  %v1053_v32 = vpop.f32.mrb[45].mxu0 }
 0x238   : > { %v1105_v5 = vadd.f32 %v1104_v31, %v4588_v13  ;;  %v1054_v28 = vadd.f32 %v1053_v32, %v4588_v13  ;;  %v1106_v38 = vpop.f32.mrb[45].mxu1  ;;  %v1055_v39 = vpop.f32.mrb[46].mxu0  ;;  %1975 = vmatprep.subr.bf16.mxu0 %v1394_v23 }
 0x239   : > { %v1107_v43 = vadd.f32 %v1106_v38, %v4588_v13  ;;  %v1056_v44 = vadd.f32 %v1055_v39, %v4590_v18  ;;  %v1108_v45 = vpop.f32.mrb[46].mxu1  ;;  %2028 = vmatprep.subr.bf16.mxu1 %v1396_v25  ;;  %v1057_v46 = vpop.f32.mrb[47].mxu0  ;;  %1976 = vmatpush1.bf16.msra.mxu0 %v1393_v15  ;;  %v1361_v35 = vmax.f32 %v1052_v29, 0.0 }
 0x23a   : > { %v1109_v49 = vadd.f32 %v1108_v45, %v4590_v18  ;;  %v1058_v50 = vadd.f32 %v1057_v46, %v4590_v18  ;;  %v1110_v51 = vpop.f32.mrb[47].mxu1  ;;  %2029 = vmatpush1.bf16.msra.mxu1 %v1395_v20  ;;  %v1363_v55 = vmax.f32 %v1105_v5, 0.0  ;;  %v1362_v56 = vmax.f32 %v1054_v28, 0.0 }
 0x23b   : > { %v1377_v53 = vmax.f32 %v1056_v44, 0.0  ;;  %v1111_v54 = vadd.f32 %v1110_v51, %v4590_v18  ;;  %v1364_v16 = vmax.f32 %v1107_v43, 0.0 }
 0x23c   : > { %v1379_v57 = vmax.f32 %v1109_v49, 0.0  ;;  %v1378_v3 = vmax.f32 %v1058_v50, 0.0  ;;  %3647 = vmatmul.mubr.msk.bf16.gmra.mrb[68].mxu0 %vm894_vm3, %v4619_v40 }
 0x23d   : > { %v1409_v21 = vpack.c.bf16 %v1377_v53, %v1361_v35  ;;  %v1380_v1 = vmax.f32 %v1111_v54, 0.0  ;;  %3649 = vmatmul.mubr.msk.bf16.gmra.mrb[68].mxu1 %vm894_vm3, %v4619_v40  ;;  %2007 = vmatprep.mubr.bf16.mxu0 %v4022_v0 }
 0x23e   : > { %v1411_v22 = vpack.c.bf16 %v1379_v57, %v1363_v55  ;;  %v1410_v27 = vpack.c.bf16 %v1378_v3, %v1362_v56  ;;  %v1147_v33 = vpop.f32.mrb[48].mxu0  ;;  %2060 = vmatprep.mubr.bf16.mxu1 %v4022_v0 }
 0x23f   : > { %v1412_v42 = vpack.c.bf16 %v1380_v1, %v1364_v16  ;;  %v1148_v47 = vadd.f32 %v1147_v33, %v4576_v37  ;;  %v1200_v48 = vpop.f32.mrb[48].mxu1  ;;  %v1149_v6 = vpop.f32.mrb[49].mxu0 }
 0x240   : > { %v1201_v8 = vadd.f32 %v1200_v48, %v4576_v37  ;;  %v1150_v9 = vadd.f32 %v1149_v6, %v4576_v37  ;;  %v1202_v10 = vpop.f32.mrb[49].mxu1  ;;  %v1151_v30 = vpop.f32.mrb[50].mxu0  ;;  %1977 = vmatprep.subr.bf16.mxu0 %v1410_v27 }
 0x241   : > { %v1203_v52 = vadd.f32 %v1202_v10, %v4576_v37  ;;  %v1152_v58 = vadd.f32 %v1151_v30, %v4578_v41  ;;  %v1204_v59 = vpop.f32.mrb[50].mxu1  ;;  %2030 = vmatprep.subr.bf16.mxu1 %v1412_v42  ;;  %v1153_v60 = vpop.f32.mrb[51].mxu0  ;;  %1978 = vmatpush1.bf16.msra.mxu0 %v1409_v21  ;;  %v1333_v2 = vmax.f32 %v1148_v47, 0.0 }
 0x242   : > { %v1205_v61 = vadd.f32 %v1204_v59, %v4578_v41  ;;  %v1154_v62 = vadd.f32 %v1153_v60, %v4578_v41  ;;  %v1206_v63 = vpop.f32.mrb[51].mxu1  ;;  %2031 = vmatpush1.bf16.msra.mxu1 %v1411_v22  ;;  %v1335_v11 = vmax.f32 %v1201_v8, 0.0  ;;  %v1334_v34 = vmax.f32 %v1150_v9, 0.0 }
 0x243   : > { %v1349_v4 = vmax.f32 %v1152_v58, 0.0  ;;  %v1207_v7 = vadd.f32 %v1206_v63, %v4578_v41  ;;  %v1336_v15 = vmax.f32 %v1203_v52, 0.0 }
 0x244   : > { %v1351_v12 = vmax.f32 %v1205_v61, 0.0  ;;  %v1350_v14 = vmax.f32 %v1154_v62, 0.0  ;;  %3650 = vmatmul.mubr.msk.bf16.vlgmr.msra.gmra.mrb[72].mxu0 %vm894_vm3, %v4603_v26 }
 0x245   : > { %v1397_v17 = vpack.c.bf16 %v1349_v4, %v1333_v2  ;;  %v1352_v36 = vmax.f32 %v1207_v7, 0.0  ;;  %3652 = vmatmul.mubr.msk.bf16.vlgmr.msra.gmra.mrb[72].mxu1 %vm894_vm3, %v4603_v26  ;;  %2017 = vmatprep.mubr.bf16.mxu0 %v4022_v0 }
 0x246   : > { %v1399_v19 = vpack.c.bf16 %v1351_v12, %v1335_v11  ;;  %v1398_v20 = vpack.c.bf16 %v1350_v14, %v1334_v34  ;;  %v1157_v23 = vpop.f32.mrb[52].mxu0  ;;  %2070 = vmatprep.mubr.bf16.mxu1 %v4022_v0 }
 0x247   : > { %v1400_v24 = vpack.c.bf16 %v1352_v36, %v1336_v15  ;;  %v1158_v25 = vadd.f32 %v1157_v23, %v4588_v13  ;;  %v1210_v29 = vpop.f32.mrb[52].mxu1  ;;  %v1159_v31 = vpop.f32.mrb[53].mxu0 }
 0x248   : > { %v1211_v32 = vadd.f32 %v1210_v29, %v4588_v13  ;;  %v1160_v5 = vadd.f32 %v1159_v31, %v4588_v13  ;;  %v1212_v28 = vpop.f32.mrb[53].mxu1  ;;  %v1161_v38 = vpop.f32.mrb[54].mxu0  ;;  %2081 = vmatprep.subr.bf16.mxu0 %v1398_v20 }
 0x249   : > { %v1213_v39 = vadd.f32 %v1212_v28, %v4588_v13  ;;  %v1162_v43 = vadd.f32 %v1161_v38, %v4590_v18  ;;  %v1214_v44 = vpop.f32.mrb[54].mxu1  ;;  %2134 = vmatprep.subr.bf16.mxu1 %v1400_v24  ;;  %v1163_v45 = vpop.f32.mrb[55].mxu0  ;;  %2082 = vmatpush1.bf16.msra.mxu0 %v1397_v17  ;;  %v1365_v51 = vmax.f32 %v1158_v25, 0.0 }
 0x24a   : > { %v1215_v46 = vadd.f32 %v1214_v44, %v4590_v18  ;;  %v1164_v49 = vadd.f32 %v1163_v45, %v4590_v18  ;;  %v1216_v50 = vpop.f32.mrb[55].mxu1  ;;  %2135 = vmatpush1.bf16.msra.mxu1 %v1399_v19  ;;  %v1367_v54 = vmax.f32 %v1211_v32, 0.0  ;;  %v1366_v55 = vmax.f32 %v1160_v5, 0.0 }
 0x24b   : > { %v1381_v35 = vmax.f32 %v1162_v43, 0.0  ;;  %v1217_v53 = vadd.f32 %v1216_v50, %v4590_v18  ;;  %v1368_v3 = vmax.f32 %v1213_v39, 0.0 }
 0x24c   : > { %v1383_v56 = vmax.f32 %v1215_v46, 0.0  ;;  %v1382_v57 = vmax.f32 %v1164_v49, 0.0  ;;  %3651 = vmatmul.mubr.msk.bf16.gmra.mrb[76].mxu0 %vm894_vm3, %v4619_v40 }
 0x24d   : > { %v1413_v16 = vpack.c.bf16 %v1381_v35, %v1365_v51  ;;  %v1384_v21 = vmax.f32 %v1217_v53, 0.0  ;;  %3653 = vmatmul.mubr.msk.bf16.gmra.mrb[76].mxu1 %vm894_vm3, %v4619_v40  ;;  %2113 = vmatprep.mubr.bf16.mxu0 %v4022_v0 }
 0x24e   : > { %v1415_v1 = vpack.c.bf16 %v1383_v56, %v1367_v54  ;;  %v1414_v22 = vpack.c.bf16 %v1382_v57, %v1366_v55  ;;  %v1253_v27 = vpop.f32.mrb[56].mxu0  ;;  %2166 = vmatprep.mubr.bf16.mxu1 %v4022_v0 }
 0x24f   : > { %v1416_v33 = vpack.c.bf16 %v1384_v21, %v1368_v3  ;;  %v1254_v42 = vadd.f32 %v1253_v27, %v4576_v37  ;;  %v1306_v47 = vpop.f32.mrb[56].mxu1  ;;  %v1255_v48 = vpop.f32.mrb[57].mxu0 }
 0x250   : > { %v1307_v6 = vadd.f32 %v1306_v47, %v4576_v37  ;;  %v1256_v8 = vadd.f32 %v1255_v48, %v4576_v37  ;;  %v1308_v9 = vpop.f32.mrb[57].mxu1  ;;  %v1257_v10 = vpop.f32.mrb[58].mxu0  ;;  %2083 = vmatprep.subr.bf16.mxu0 %v1414_v22 }
 0x251   : > { %v1309_v30 = vadd.f32 %v1308_v9, %v4576_v37  ;;  %v1258_v52 = vadd.f32 %v1257_v10, %v4578_v41  ;;  %v1310_v58 = vpop.f32.mrb[58].mxu1  ;;  %2136 = vmatprep.subr.bf16.mxu1 %v1416_v33  ;;  %v1259_v59 = vpop.f32.mrb[59].mxu0  ;;  %2084 = vmatpush1.bf16.msra.mxu0 %v1413_v16  ;;  %v1337_v63 = vmax.f32 %v1254_v42, 0.0 }
 0x252   : > { %v1311_v60 = vadd.f32 %v1310_v58, %v4578_v41  ;;  %v1260_v61 = vadd.f32 %v1259_v59, %v4578_v41  ;;  %v1312_v62 = vpop.f32.mrb[59].mxu1  ;;  %2137 = vmatpush1.bf16.msra.mxu1 %v1415_v1  ;;  %v1339_v7 = vmax.f32 %v1307_v6, 0.0  ;;  %v1338_v11 = vmax.f32 %v1256_v8, 0.0  ;;  %v4700_v16 = vpop.permute.xlu0 %2299 }
 0x253   : > { %v1353_v2 = vmax.f32 %v1258_v52, 0.0  ;;  %v1313_v4 = vadd.f32 %v1312_v62, %v4578_v41  ;;  %v1340_v12 = vmax.f32 %v1309_v30, 0.0  ;;  %v4702_v21 = vpop.permute.xlu1 %2304 }
 0x254   : > { %v1355_v34 = vmax.f32 %v1311_v60, 0.0  ;;  %v1354_v37 = vmax.f32 %v1260_v61, 0.0  ;;  %3654 = vmatmul.mubr.msk.bf16.vlgmr.msra.gmra.mrb[80].mxu0 %vm894_vm3, %v4603_v26 }
 0x255   : > { %v1401_v14 = vpack.c.bf16 %v1353_v2, %v1337_v63  ;;  %v1356_v15 = vmax.f32 %v1313_v4, 0.0  ;;  %3656 = vmatmul.mubr.msk.bf16.vlgmr.msra.gmra.mrb[80].mxu1 %vm894_vm3, %v4603_v26  ;;  %2123 = vmatprep.mubr.bf16.mxu0 %v4022_v0 }
 0x256   : > { %v1403_v17 = vpack.c.bf16 %v1355_v34, %v1339_v7  ;;  %v1402_v36 = vpack.c.bf16 %v1354_v37, %v1338_v11  ;;  %v1263_v19 = vpop.f32.mrb[60].mxu0  ;;  %2176 = vmatprep.mubr.bf16.mxu1 %v4022_v0  ;;  %v4712_v4 = vpop.permute.xlu0 %2309 }
 0x257   : > { %v1404_v41 = vpack.c.bf16 %v1356_v15, %v1340_v12  ;;  %v1264_v20 = vadd.f32 %v1263_v19, %v4588_v13  ;;  %v1316_v23 = vpop.f32.mrb[60].mxu1  ;;  %v1265_v24 = vpop.f32.mrb[61].mxu0 }
 0x258   : > { %v1317_v25 = vadd.f32 %v1316_v23, %v4588_v13  ;;  %v1266_v29 = vadd.f32 %v1265_v24, %v4588_v13  ;;  %v1318_v31 = vpop.f32.mrb[61].mxu1  ;;  %v1267_v32 = vpop.f32.mrb[62].mxu0  ;;  %2187 = vmatprep.subr.bf16.mxu0 %v1402_v36 }
 0x259   : > { %v1319_v5 = vadd.f32 %v1318_v31, %v4588_v13  ;;  %v1268_v28 = vadd.f32 %v1267_v32, %v4590_v18  ;;  %v1320_v38 = vpop.f32.mrb[62].mxu1  ;;  %2240 = vmatprep.subr.bf16.mxu1 %v1404_v41  ;;  %v1269_v39 = vpop.f32.mrb[63].mxu0  ;;  %2188 = vmatpush1.bf16.msra.mxu0 %v1401_v14  ;;  %v1369_v46 = vmax.f32 %v1264_v20, 0.0 }
 0x25a   : > { %v1321_v43 = vadd.f32 %v1320_v38, %v4590_v18  ;;  %v1270_v44 = vadd.f32 %v1269_v39, %v4590_v18  ;;  %v1322_v45 = vpop.f32.mrb[63].mxu1  ;;  %2241 = vmatpush1.bf16.msra.mxu1 %v1403_v17  ;;  %v1371_v51 = vmax.f32 %v1317_v25, 0.0  ;;  %v1370_v35 = vmax.f32 %v1266_v29, 0.0  ;;  %v4714_v37 = vpop.permute.xlu1 %2314 }
 0x25b   : > { %v1385_v49 = vmax.f32 %v1268_v28, 0.0  ;;  %v1323_v50 = vadd.f32 %v1322_v45, %v4590_v18  ;;  %v1372_v54 = vmax.f32 %v1319_v5, 0.0 }
 0x25c   : > { %v1387_v53 = vmax.f32 %v1321_v43, 0.0  ;;  %v1386_v13 = vmax.f32 %v1270_v44, 0.0  ;;  %3655 = vmatmul.mubr.msk.bf16.gmra.mrb[84].mxu0 %vm894_vm3, %v4619_v40 }
 0x25d   : > { %v1417_v55 = vpack.c.bf16 %v1385_v49, %v1369_v46  ;;  %v1388_v56 = vmax.f32 %v1323_v50, 0.0  ;;  %3657 = vmatmul.mubr.msk.bf16.gmra.mrb[84].mxu1 %vm894_vm3, %v4619_v40  ;;  %2219 = vmatprep.mubr.bf16.mxu0 %v4022_v0 }
 0x25e   : > { %v1419_v57 = vpack.c.bf16 %v1387_v53, %v1371_v51  ;;  %v1418_v3 = vpack.c.bf16 %v1386_v13, %v1370_v35  ;;  %2272 = vmatprep.mubr.bf16.mxu1 %v4022_v0 }
 0x25f   : > { %v1420_v18 = vpack.c.bf16 %v1388_v56, %v1372_v54  ;;  %v2477_v54 = vld [vmem:[#allocation5 + $0x80] sm:$0xff] }
 0x260   : > { %2189 = vmatprep.subr.bf16.mxu0 %v1418_v3 }
 0x261   : > { %2242 = vmatprep.subr.bf16.mxu1 %v1420_v18  ;;  %2190 = vmatpush1.bf16.msra.mxu0 %v1417_v55  ;;  %v2478_v55 = vld [vmem:[#allocation5 + $0x88] sm:$0xff] }
 0x262   : > { %2243 = vmatpush1.bf16.msra.mxu1 %v1419_v57 }
 0x264   : > { %3658 = vmatmul.mubr.msk.bf16.vlgmr.msra.gmra.mrb[88].mxu0 %vm894_vm3, %v4603_v26 }
 0x265   : > { %3660 = vmatmul.mubr.msk.bf16.vlgmr.msra.gmra.mrb[88].mxu1 %vm894_vm3, %v4603_v26  ;;  %2229 = vmatprep.mubr.bf16.mxu0 %v4022_v0 }
 0x266   : > { %2282 = vmatprep.mubr.bf16.mxu1 %v4022_v0 }
 0x26c   : > { %3659 = vmatmul.mubr.msk.bf16.gmra.mrb[92].mxu0 %vm894_vm3, %v4619_v40 }
 0x26d   : > { %3661 = vmatmul.mubr.msk.bf16.gmra.mrb[92].mxu1 %vm894_vm3, %v4619_v40  ;;  %2545 = vmatprep.mubr.bf16.mxu0 %v4022_v0 }
 0x26e   : > { %2598 = vmatprep.mubr.bf16.mxu1 %v4022_v0 }
 0x307   : > { %v1903_v1 = vpop.f32.mrb[64].mxu0 }
 0x308   : > { %v2317_v26 = vadd.f32 %v4700_v16, %v1903_v1  ;;  %v1956_v22 = vpop.f32.mrb[64].mxu1  ;;  %v1905_v27 = vpop.f32.mrb[65].mxu0 }
 0x309   : > { %v2319_v33 = vadd.f32 %v4700_v16, %v1956_v22  ;;  %v2318_v42 = vadd.f32 %v4700_v16, %v1905_v27  ;;  %v1958_v47 = vpop.f32.mrb[65].mxu1  ;;  %v1907_v48 = vpop.f32.mrb[66].mxu0 }
 0x30a   : > { %v2320_v40 = vadd.f32 %v4700_v16, %v1958_v47  ;;  %v2333_v6 = vadd.f32 %v4702_v21, %v1907_v48  ;;  %v1960_v8 = vpop.f32.mrb[66].mxu1  ;;  %v1909_v9 = vpop.f32.mrb[67].mxu0  ;;  %v2381_v58 = vmax.f32 %v2317_v26, 0.0  ;;  %v4727_v48 = vpack.c.bf16 %v2478_v55, %v2477_v54 }
 0x30b   : > { %v2335_v10 = vadd.f32 %v4702_v21, %v1960_v8  ;;  %v2334_v30 = vadd.f32 %v4702_v21, %v1909_v9  ;;  %v1962_v52 = vpop.f32.mrb[67].mxu1  ;;  %v2383_v61 = vmax.f32 %v2319_v33, 0.0  ;;  %v2382_v62 = vmax.f32 %v2318_v42, 0.0 }
 0x30c   : > { %v2397_v59 = vmax.f32 %v2333_v6, 0.0  ;;  %v2336_v60 = vadd.f32 %v4702_v21, %v1962_v52  ;;  %v2384_v7 = vmax.f32 %v2320_v40, 0.0 }
 0x30d   : > { %v2399_v63 = vmax.f32 %v2335_v10, 0.0  ;;  %v2398_v2 = vmax.f32 %v2334_v30, 0.0 }
 0x30e   : > { %v2445_v11 = vpack.c.bf16 %v2397_v59, %v2381_v58  ;;  %v2400_v34 = vmax.f32 %v2336_v60, 0.0 }
 0x30f   : > { %v2447_v12 = vpack.c.bf16 %v2399_v63, %v2383_v61  ;;  %v2446_v14 = vpack.c.bf16 %v2398_v2, %v2382_v62  ;;  %v1913_v15 = vpop.f32.mrb[68].mxu0 }
 0x310   : > { %v2448_v17 = vpack.c.bf16 %v2400_v34, %v2384_v7  ;;  %v2349_v36 = vadd.f32 %v4712_v4, %v1913_v15  ;;  %v1966_v19 = vpop.f32.mrb[68].mxu1  ;;  %v1915_v41 = vpop.f32.mrb[69].mxu0 }
 0x311   : > { %v2351_v20 = vadd.f32 %v4712_v4, %v1966_v19  ;;  %v2350_v23 = vadd.f32 %v4712_v4, %v1915_v41  ;;  %v1968_v24 = vpop.f32.mrb[69].mxu1  ;;  %v1917_v25 = vpop.f32.mrb[70].mxu0  ;;  %2513 = vmatprep.subr.bf16.mxu0 %v2446_v14  ;;  %v2480_v14 = vld [vmem:[#allocation5 + $0x98] sm:$0xff] }
 0x312   : > { %v2352_v29 = vadd.f32 %v4712_v4, %v1968_v24  ;;  %v2365_v31 = vadd.f32 %v4714_v37, %v1917_v25  ;;  %v1970_v32 = vpop.f32.mrb[70].mxu1  ;;  %2566 = vmatprep.subr.bf16.mxu1 %v2448_v17  ;;  %v1919_v5 = vpop.f32.mrb[71].mxu0  ;;  %2514 = vmatpush1.bf16.msra.mxu0 %v2445_v11  ;;  %v2413_v43 = vmax.f32 %v2349_v36, 0.0 }
 0x313   : > { %v2367_v28 = vadd.f32 %v4714_v37, %v1970_v32  ;;  %v2366_v38 = vadd.f32 %v4714_v37, %v1919_v5  ;;  %v1972_v39 = vpop.f32.mrb[71].mxu1  ;;  %2567 = vmatpush1.bf16.msra.mxu1 %v2447_v12  ;;  %v2415_v46 = vmax.f32 %v2351_v20, 0.0  ;;  %v2414_v49 = vmax.f32 %v2350_v23, 0.0  ;;  %v2479_v12 = vld [vmem:[#allocation5 + $0x90] sm:$0xff] }
 0x314   : > { %v2429_v44 = vmax.f32 %v2365_v31, 0.0  ;;  %v2368_v45 = vadd.f32 %v4714_v37, %v1972_v39  ;;  %v2416_v35 = vmax.f32 %v2352_v29, 0.0  ;;  %v4743_v32 = vpack.c.bf16 %v2480_v14, %v2479_v12 }
 0x315   : > { %v2431_v50 = vmax.f32 %v2367_v28, 0.0  ;;  %v2430_v51 = vmax.f32 %v2366_v38, 0.0 }
 0x316   : > { %v2461_v53 = vpack.c.bf16 %v2429_v44, %v2413_v43  ;;  %v2432_v13 = vmax.f32 %v2368_v45, 0.0 }
 0x317   : > { %v2463_v56 = vpack.c.bf16 %v2431_v50, %v2415_v46  ;;  %v2462_v57 = vpack.c.bf16 %v2430_v51, %v2414_v49  ;;  %v2009_v3 = vpop.f32.mrb[72].mxu0 }
 0x318   : > { %v2464_v18 = vpack.c.bf16 %v2432_v13, %v2416_v35  ;;  %v2321_v1 = vadd.f32 %v4700_v16, %v2009_v3  ;;  %v2062_v26 = vpop.f32.mrb[72].mxu1  ;;  %v2011_v22 = vpop.f32.mrb[73].mxu0 }
 0x319   : > { %v2323_v27 = vadd.f32 %v4700_v16, %v2062_v26  ;;  %v2322_v33 = vadd.f32 %v4700_v16, %v2011_v22  ;;  %v2064_v42 = vpop.f32.mrb[73].mxu1  ;;  %v2013_v47 = vpop.f32.mrb[74].mxu0  ;;  %2515 = vmatprep.subr.bf16.mxu0 %v2462_v57 }
 0x31a   : > { %v2324_v40 = vadd.f32 %v4700_v16, %v2064_v42  ;;  %v2337_v6 = vadd.f32 %v4702_v21, %v2013_v47  ;;  %v2066_v8 = vpop.f32.mrb[74].mxu1  ;;  %2568 = vmatprep.subr.bf16.mxu1 %v2464_v18  ;;  %v2015_v9 = vpop.f32.mrb[75].mxu0  ;;  %2516 = vmatpush1.bf16.msra.mxu0 %v2461_v53  ;;  %v2385_v58 = vmax.f32 %v2321_v1, 0.0 }
 0x31b   : > { %v2339_v10 = vadd.f32 %v4702_v21, %v2066_v8  ;;  %v2338_v30 = vadd.f32 %v4702_v21, %v2015_v9  ;;  %v2068_v52 = vpop.f32.mrb[75].mxu1  ;;  %2569 = vmatpush1.bf16.msra.mxu1 %v2463_v56  ;;  %v2387_v61 = vmax.f32 %v2323_v27, 0.0  ;;  %v2386_v62 = vmax.f32 %v2322_v33, 0.0 }
 0x31c   : > { %v2401_v59 = vmax.f32 %v2337_v6, 0.0  ;;  %v2340_v60 = vadd.f32 %v4702_v21, %v2068_v52  ;;  %v2388_v7 = vmax.f32 %v2324_v40, 0.0 }
 0x31d   : > { %v2403_v63 = vmax.f32 %v2339_v10, 0.0  ;;  %v2402_v2 = vmax.f32 %v2338_v30, 0.0  ;;  %3662 = vmatmul.mubr.msk.bf16.vlgmr.msra.gmra.mrb[96].mxu0 %vm894_vm3, %v4727_v48 }
 0x31e   : > { %v2449_v11 = vpack.c.bf16 %v2401_v59, %v2385_v58  ;;  %v2404_v34 = vmax.f32 %v2340_v60, 0.0  ;;  %3664 = vmatmul.mubr.msk.bf16.vlgmr.msra.gmra.mrb[96].mxu1 %vm894_vm3, %v4727_v48  ;;  %2555 = vmatprep.mubr.bf16.mxu0 %v4022_v0 }
 0x31f   : > { %v2451_v15 = vpack.c.bf16 %v2403_v63, %v2387_v61  ;;  %v2450_v17 = vpack.c.bf16 %v2402_v2, %v2386_v62  ;;  %v2019_v36 = vpop.f32.mrb[76].mxu0  ;;  %2608 = vmatprep.mubr.bf16.mxu1 %v4022_v0 }
 0x320   : > { %v2452_v19 = vpack.c.bf16 %v2404_v34, %v2388_v7  ;;  %v2353_v41 = vadd.f32 %v4712_v4, %v2019_v36  ;;  %v2072_v20 = vpop.f32.mrb[76].mxu1  ;;  %v2021_v23 = vpop.f32.mrb[77].mxu0 }
 0x321   : > { %v2355_v24 = vadd.f32 %v4712_v4, %v2072_v20  ;;  %v2354_v25 = vadd.f32 %v4712_v4, %v2021_v23  ;;  %v2074_v29 = vpop.f32.mrb[77].mxu1  ;;  %v2023_v31 = vpop.f32.mrb[78].mxu0  ;;  %2619 = vmatprep.subr.bf16.mxu0 %v2450_v17 }
 0x322   : > { %v2356_v5 = vadd.f32 %v4712_v4, %v2074_v29  ;;  %v2369_v28 = vadd.f32 %v4714_v37, %v2023_v31  ;;  %v2076_v38 = vpop.f32.mrb[78].mxu1  ;;  %2672 = vmatprep.subr.bf16.mxu1 %v2452_v19  ;;  %v2025_v39 = vpop.f32.mrb[79].mxu0  ;;  %2620 = vmatpush1.bf16.msra.mxu0 %v2449_v11  ;;  %v2417_v46 = vmax.f32 %v2353_v41, 0.0 }
 0x323   : > { %v2371_v43 = vadd.f32 %v4714_v37, %v2076_v38  ;;  %v2370_v44 = vadd.f32 %v4714_v37, %v2025_v39  ;;  %v2078_v45 = vpop.f32.mrb[79].mxu1  ;;  %2673 = vmatpush1.bf16.msra.mxu1 %v2451_v15  ;;  %v2419_v51 = vmax.f32 %v2355_v24, 0.0  ;;  %v2418_v35 = vmax.f32 %v2354_v25, 0.0 }
 0x324   : > { %v2433_v49 = vmax.f32 %v2369_v28, 0.0  ;;  %v2372_v50 = vadd.f32 %v4714_v37, %v2078_v45  ;;  %v2420_v54 = vmax.f32 %v2356_v5, 0.0 }
 0x325   : > { %v2435_v53 = vmax.f32 %v2371_v43, 0.0  ;;  %v2434_v13 = vmax.f32 %v2370_v44, 0.0  ;;  %3663 = vmatmul.mubr.msk.bf16.gmra.mrb[100].mxu0 %vm894_vm3, %v4743_v32 }
 0x326   : > { %v2465_v55 = vpack.c.bf16 %v2433_v49, %v2417_v46  ;;  %v2436_v56 = vmax.f32 %v2372_v50, 0.0  ;;  %3665 = vmatmul.mubr.msk.bf16.gmra.mrb[100].mxu1 %vm894_vm3, %v4743_v32  ;;  %2651 = vmatprep.mubr.bf16.mxu0 %v4022_v0 }
 0x327   : > { %v2467_v57 = vpack.c.bf16 %v2435_v53, %v2419_v51  ;;  %v2466_v3 = vpack.c.bf16 %v2434_v13, %v2418_v35  ;;  %v2115_v18 = vpop.f32.mrb[80].mxu0  ;;  %2704 = vmatprep.mubr.bf16.mxu1 %v4022_v0 }
 0x328   : > { %v2468_v1 = vpack.c.bf16 %v2436_v56, %v2420_v54  ;;  %v2325_v26 = vadd.f32 %v4700_v16, %v2115_v18  ;;  %v2168_v22 = vpop.f32.mrb[80].mxu1  ;;  %v2117_v27 = vpop.f32.mrb[81].mxu0 }
 0x329   : > { %v2327_v33 = vadd.f32 %v4700_v16, %v2168_v22  ;;  %v2326_v42 = vadd.f32 %v4700_v16, %v2117_v27  ;;  %v2170_v47 = vpop.f32.mrb[81].mxu1  ;;  %v2119_v40 = vpop.f32.mrb[82].mxu0  ;;  %2621 = vmatprep.subr.bf16.mxu0 %v2466_v3 }
 0x32a   : > { %v2328_v6 = vadd.f32 %v4700_v16, %v2170_v47  ;;  %v2341_v8 = vadd.f32 %v4702_v21, %v2119_v40  ;;  %v2172_v9 = vpop.f32.mrb[82].mxu1  ;;  %2674 = vmatprep.subr.bf16.mxu1 %v2468_v1  ;;  %v2121_v10 = vpop.f32.mrb[83].mxu0  ;;  %2622 = vmatpush1.bf16.msra.mxu0 %v2465_v55  ;;  %v2389_v59 = vmax.f32 %v2325_v26, 0.0 }
 0x32b   : > { %v2343_v30 = vadd.f32 %v4702_v21, %v2172_v9  ;;  %v2342_v52 = vadd.f32 %v4702_v21, %v2121_v10  ;;  %v2174_v58 = vpop.f32.mrb[83].mxu1  ;;  %2675 = vmatpush1.bf16.msra.mxu1 %v2467_v57  ;;  %v2391_v62 = vmax.f32 %v2327_v33, 0.0  ;;  %v2390_v63 = vmax.f32 %v2326_v42, 0.0 }
 0x32c   : > { %v2405_v60 = vmax.f32 %v2341_v8, 0.0  ;;  %v2344_v61 = vadd.f32 %v4702_v21, %v2174_v58  ;;  %v2392_v11 = vmax.f32 %v2328_v6, 0.0 }
 0x32d   : > { %v2407_v2 = vmax.f32 %v2343_v30, 0.0  ;;  %v2406_v7 = vmax.f32 %v2342_v52, 0.0  ;;  %3666 = vmatmul.mubr.msk.bf16.vlgmr.msra.gmra.mrb[104].mxu0 %vm894_vm3, %v4727_v48 }
 0x32e   : > { %v2453_v34 = vpack.c.bf16 %v2405_v60, %v2389_v59  ;;  %v2408_v12 = vmax.f32 %v2344_v61, 0.0  ;;  %3668 = vmatmul.mubr.msk.bf16.vlgmr.msra.gmra.mrb[104].mxu1 %vm894_vm3, %v4727_v48  ;;  %2661 = vmatprep.mubr.bf16.mxu0 %v4022_v0 }
 0x32f   : > { %v2455_v14 = vpack.c.bf16 %v2407_v2, %v2391_v62  ;;  %v2454_v15 = vpack.c.bf16 %v2406_v7, %v2390_v63  ;;  %v2125_v17 = vpop.f32.mrb[84].mxu0  ;;  %2714 = vmatprep.mubr.bf16.mxu1 %v4022_v0 }
 0x330   : > { %v2456_v36 = vpack.c.bf16 %v2408_v12, %v2392_v11  ;;  %v2357_v19 = vadd.f32 %v4712_v4, %v2125_v17  ;;  %v2178_v41 = vpop.f32.mrb[84].mxu1  ;;  %v2127_v20 = vpop.f32.mrb[85].mxu0 }
 0x331   : > { %v2359_v23 = vadd.f32 %v4712_v4, %v2178_v41  ;;  %v2358_v24 = vadd.f32 %v4712_v4, %v2127_v20  ;;  %v2180_v25 = vpop.f32.mrb[85].mxu1  ;;  %v2129_v29 = vpop.f32.mrb[86].mxu0  ;;  %2725 = vmatprep.subr.bf16.mxu0 %v2454_v15 }
 0x332   : > { %v2360_v31 = vadd.f32 %v4712_v4, %v2180_v25  ;;  %v2373_v5 = vadd.f32 %v4714_v37, %v2129_v29  ;;  %v2182_v28 = vpop.f32.mrb[86].mxu1  ;;  %2778 = vmatprep.subr.bf16.mxu1 %v2456_v36  ;;  %v2131_v38 = vpop.f32.mrb[87].mxu0  ;;  %2726 = vmatpush1.bf16.msra.mxu0 %v2453_v34  ;;  %v2421_v45 = vmax.f32 %v2357_v19, 0.0 }
 0x333   : > { %v2375_v39 = vadd.f32 %v4714_v37, %v2182_v28  ;;  %v2374_v43 = vadd.f32 %v4714_v37, %v2131_v38  ;;  %v2184_v44 = vpop.f32.mrb[87].mxu1  ;;  %2779 = vmatpush1.bf16.msra.mxu1 %v2455_v14  ;;  %v2423_v50 = vmax.f32 %v2359_v23, 0.0  ;;  %v2422_v51 = vmax.f32 %v2358_v24, 0.0 }
 0x334   : > { %v2437_v46 = vmax.f32 %v2373_v5, 0.0  ;;  %v2376_v49 = vadd.f32 %v4714_v37, %v2184_v44  ;;  %v2424_v13 = vmax.f32 %v2360_v31, 0.0 }
 0x335   : > { %v2439_v35 = vmax.f32 %v2375_v39, 0.0  ;;  %v2438_v53 = vmax.f32 %v2374_v43, 0.0  ;;  %3667 = vmatmul.mubr.msk.bf16.gmra.mrb[108].mxu0 %vm894_vm3, %v4743_v32 }
 0x336   : > { %v2469_v54 = vpack.c.bf16 %v2437_v46, %v2421_v45  ;;  %v2440_v55 = vmax.f32 %v2376_v49, 0.0  ;;  %3669 = vmatmul.mubr.msk.bf16.gmra.mrb[108].mxu1 %vm894_vm3, %v4743_v32  ;;  %2757 = vmatprep.mubr.bf16.mxu0 %v4022_v0 }
 0x337   : > { %v2471_v56 = vpack.c.bf16 %v2439_v35, %v2423_v50  ;;  %v2470_v57 = vpack.c.bf16 %v2438_v53, %v2422_v51  ;;  %v2221_v3 = vpop.f32.mrb[88].mxu0  ;;  %2810 = vmatprep.mubr.bf16.mxu1 %v4022_v0 }
 0x338   : > { %v2472_v18 = vpack.c.bf16 %v2440_v55, %v2424_v13  ;;  %v2329_v1 = vadd.f32 %v4700_v16, %v2221_v3  ;;  %v2274_v26 = vpop.f32.mrb[88].mxu1  ;;  %v2223_v22 = vpop.f32.mrb[89].mxu0 }
 0x339   : > { %v2331_v27 = vadd.f32 %v4700_v16, %v2274_v26  ;;  %v2330_v33 = vadd.f32 %v4700_v16, %v2223_v22  ;;  %v2276_v42 = vpop.f32.mrb[89].mxu1  ;;  %v2225_v47 = vpop.f32.mrb[90].mxu0  ;;  %2727 = vmatprep.subr.bf16.mxu0 %v2470_v57 }
 0x33a   : > { %v2332_v40 = vadd.f32 %v4700_v16, %v2276_v42  ;;  %v2345_v6 = vadd.f32 %v4702_v21, %v2225_v47  ;;  %v2278_v8 = vpop.f32.mrb[90].mxu1  ;;  %2780 = vmatprep.subr.bf16.mxu1 %v2472_v18  ;;  %v2227_v9 = vpop.f32.mrb[91].mxu0  ;;  %2728 = vmatpush1.bf16.msra.mxu0 %v2469_v54  ;;  %v2393_v58 = vmax.f32 %v2329_v1, 0.0 }
 0x33b   : > { %v2347_v10 = vadd.f32 %v4702_v21, %v2278_v8  ;;  %v2346_v30 = vadd.f32 %v4702_v21, %v2227_v9  ;;  %v2280_v52 = vpop.f32.mrb[91].mxu1  ;;  %2781 = vmatpush1.bf16.msra.mxu1 %v2471_v56  ;;  %v2395_v61 = vmax.f32 %v2331_v27, 0.0  ;;  %v2394_v62 = vmax.f32 %v2330_v33, 0.0  ;;  %v4824_v54 = vpop.permute.xlu0 %2489 }
 0x33c   : > { %v2409_v59 = vmax.f32 %v2345_v6, 0.0  ;;  %v2348_v60 = vadd.f32 %v4702_v21, %v2280_v52  ;;  %v2396_v2 = vmax.f32 %v2332_v40, 0.0  ;;  %v4826_v55 = vpop.permute.xlu1 %2494 }
 0x33d   : > { %v2411_v63 = vmax.f32 %v2347_v10, 0.0  ;;  %v2410_v16 = vmax.f32 %v2346_v30, 0.0  ;;  %3670 = vmatmul.mubr.msk.bf16.vlgmr.msra.gmra.mrb[112].mxu0 %vm894_vm3, %v4727_v48 }
 0x33e   : > { %v2457_v7 = vpack.c.bf16 %v2409_v59, %v2393_v58  ;;  %v2412_v11 = vmax.f32 %v2348_v60, 0.0  ;;  %3672 = vmatmul.mubr.msk.bf16.vlgmr.msra.gmra.mrb[112].mxu1 %vm894_vm3, %v4727_v48  ;;  %2767 = vmatprep.mubr.bf16.mxu0 %v4022_v0 }
 0x33f   : > { %v2459_v34 = vpack.c.bf16 %v2411_v63, %v2395_v61  ;;  %v2458_v12 = vpack.c.bf16 %v2410_v16, %v2394_v62  ;;  %v2231_v14 = vpop.f32.mrb[92].mxu0  ;;  %2820 = vmatprep.mubr.bf16.mxu1 %v4022_v0  ;;  %v4836_v60 = vpop.permute.xlu0 %2499 }
 0x340   : > { %v2460_v21 = vpack.c.bf16 %v2412_v11, %v2396_v2  ;;  %v2361_v15 = vadd.f32 %v4712_v4, %v2231_v14  ;;  %v2284_v17 = vpop.f32.mrb[92].mxu1  ;;  %v2233_v36 = vpop.f32.mrb[93].mxu0 }
 0x341   : > { %v2363_v19 = vadd.f32 %v4712_v4, %v2284_v17  ;;  %v2362_v41 = vadd.f32 %v4712_v4, %v2233_v36  ;;  %v2286_v20 = vpop.f32.mrb[93].mxu1  ;;  %v2235_v23 = vpop.f32.mrb[94].mxu0  ;;  %2831 = vmatprep.subr.bf16.mxu0 %v2458_v12 }
 0x342   : > { %v2364_v24 = vadd.f32 %v4712_v4, %v2286_v20  ;;  %v2377_v25 = vadd.f32 %v4714_v37, %v2235_v23  ;;  %v2288_v29 = vpop.f32.mrb[94].mxu1  ;;  %2884 = vmatprep.subr.bf16.mxu1 %v2460_v21  ;;  %v2237_v31 = vpop.f32.mrb[95].mxu0  ;;  %2832 = vmatpush1.bf16.msra.mxu0 %v2457_v7  ;;  %v2425_v39 = vmax.f32 %v2361_v15, 0.0 }
 0x343   : > { %v2379_v5 = vadd.f32 %v4714_v37, %v2288_v29  ;;  %v2378_v28 = vadd.f32 %v4714_v37, %v2237_v31  ;;  %v2290_v38 = vpop.f32.mrb[95].mxu1  ;;  %2885 = vmatpush1.bf16.msra.mxu1 %v2459_v34  ;;  %v2427_v45 = vmax.f32 %v2363_v19, 0.0  ;;  %v2426_v46 = vmax.f32 %v2362_v41, 0.0  ;;  %v4838_v16 = vpop.permute.xlu1 %2504 }
 0x344   : > { %v2441_v43 = vmax.f32 %v2377_v25, 0.0  ;;  %v2380_v44 = vadd.f32 %v4714_v37, %v2290_v38  ;;  %v2428_v50 = vmax.f32 %v2364_v24, 0.0 }
 0x345   : > { %v2443_v49 = vmax.f32 %v2379_v5, 0.0  ;;  %v2442_v4 = vmax.f32 %v2378_v28, 0.0  ;;  %3671 = vmatmul.mubr.msk.bf16.gmra.mrb[116].mxu0 %vm894_vm3, %v4743_v32 }
 0x346   : > { %v2473_v51 = vpack.c.bf16 %v2441_v43, %v2425_v39  ;;  %v2444_v35 = vmax.f32 %v2380_v44, 0.0  ;;  %3673 = vmatmul.mubr.msk.bf16.gmra.mrb[116].mxu1 %vm894_vm3, %v4743_v32  ;;  %2863 = vmatprep.mubr.bf16.mxu0 %v4022_v0 }
 0x347   : > { %v2475_v53 = vpack.c.bf16 %v2443_v49, %v2427_v45  ;;  %v2474_v13 = vpack.c.bf16 %v2442_v4, %v2426_v46  ;;  %2916 = vmatprep.mubr.bf16.mxu1 %v4022_v0 }
 0x348   : > { %v2476_v37 = vpack.c.bf16 %v2444_v35, %v2428_v50  ;;  %v3033_v50 = vld [vmem:[#allocation5 + $0xa0] sm:$0x7] }
 0x349   : > { %2833 = vmatprep.subr.bf16.mxu0 %v2474_v13 }
 0x34a   : > { %2886 = vmatprep.subr.bf16.mxu1 %v2476_v37  ;;  %2834 = vmatpush1.bf16.msra.mxu0 %v2473_v51 }
 0x34b   : > { %2887 = vmatpush1.bf16.msra.mxu1 %v2475_v53 }
 0x34d   : > { %3674 = vmatmul.mubr.msk.bf16.vlgmr.msra.gmra.mrb[120].mxu0 %vm894_vm3, %v4727_v48 }
 0x34e   : > { %3676 = vmatmul.mubr.msk.bf16.vlgmr.msra.gmra.mrb[120].mxu1 %vm894_vm3, %v4727_v48  ;;  %2873 = vmatprep.mubr.bf16.mxu0 %v4022_v0 }
 0x34f   : > { %2926 = vmatprep.mubr.bf16.mxu1 %v4022_v0 }
 0x355   : > { %3675 = vmatmul.mubr.msk.bf16.gmra.mrb[124].mxu0 %vm894_vm3, %v4743_v32 }
 0x356   : > { %3677 = vmatmul.mubr.msk.bf16.gmra.mrb[124].mxu1 %vm894_vm3, %v4743_v32  ;;  %3076 = vmatprep.mubr.bf16.mxu0 %v4022_v0 }
 0x357   : > { %3117 = vmatprep.mubr.bf16.mxu1 %v4022_v0 }
 0x3f0   : > { %v2547_v56 = vpop.f32.mrb[96].mxu0 }
 0x3f1   : > { %v2548_v48 = vadd.f32 %v2547_v56, %v4824_v54  ;;  %v2600_v57 = vpop.f32.mrb[96].mxu1  ;;  %v2549_v3 = vpop.f32.mrb[97].mxu0 }
 0x3f2   : > { %v2601_v18 = vadd.f32 %v2600_v57, %v4824_v54  ;;  %v2550_v1 = vadd.f32 %v2549_v3, %v4824_v54  ;;  %v2602_v26 = vpop.f32.mrb[97].mxu1  ;;  %v2551_v22 = vpop.f32.mrb[98].mxu0 }
 0x3f3   : > { %v2603_v32 = vadd.f32 %v2602_v26, %v4824_v54  ;;  %v2552_v27 = vadd.f32 %v2551_v22, %v4826_v55  ;;  %v2604_v33 = vpop.f32.mrb[98].mxu1  ;;  %v2553_v42 = vpop.f32.mrb[99].mxu0  ;;  %v2937_v8 = vmax.f32 %v2548_v48, 0.0  ;;  %v4851_v26 = vpack.c.bf16 %v3033_v50, %v3033_v50 }
 0x3f4   : > { %v2605_v47 = vadd.f32 %v2604_v33, %v4826_v55  ;;  %v2554_v40 = vadd.f32 %v2553_v42, %v4826_v55  ;;  %v2606_v6 = vpop.f32.mrb[99].mxu1  ;;  %v2939_v30 = vmax.f32 %v2601_v18, 0.0  ;;  %v2938_v52 = vmax.f32 %v2550_v1, 0.0 }
 0x3f5   : > { %v2953_v9 = vmax.f32 %v2552_v27, 0.0  ;;  %v2607_v10 = vadd.f32 %v2606_v6, %v4826_v55  ;;  %v2940_v61 = vmax.f32 %v2603_v32, 0.0 }
 0x3f6   : > { %v2955_v58 = vmax.f32 %v2605_v47, 0.0  ;;  %v2954_v59 = vmax.f32 %v2554_v40, 0.0 }
 0x3f7   : > { %v3001_v62 = vpack.c.bf16 %v2953_v9, %v2937_v8  ;;  %v2956_v63 = vmax.f32 %v2607_v10, 0.0 }
 0x3f8   : > { %v3003_v2 = vpack.c.bf16 %v2955_v58, %v2939_v30  ;;  %v3002_v7 = vpack.c.bf16 %v2954_v59, %v2938_v52  ;;  %v2557_v11 = vpop.f32.mrb[100].mxu0 }
 0x3f9   : > { %v3004_v34 = vpack.c.bf16 %v2956_v63, %v2940_v61  ;;  %v2558_v12 = vadd.f32 %v2557_v11, %v4836_v60  ;;  %v2610_v14 = vpop.f32.mrb[100].mxu1  ;;  %v2559_v21 = vpop.f32.mrb[101].mxu0 }
 0x3fa   : > { %v2611_v15 = vadd.f32 %v2610_v14, %v4836_v60  ;;  %v2560_v17 = vadd.f32 %v2559_v21, %v4836_v60  ;;  %v2612_v36 = vpop.f32.mrb[101].mxu1  ;;  %v2561_v19 = vpop.f32.mrb[102].mxu0  ;;  %3044 = vmatprep.subr.bf16.mxu0 %v3002_v7 }
 0x3fb   : > { %v2613_v41 = vadd.f32 %v2612_v36, %v4836_v60  ;;  %v2562_v20 = vadd.f32 %v2561_v19, %v4838_v16  ;;  %v2614_v23 = vpop.f32.mrb[102].mxu1  ;;  %3085 = vmatprep.subr.bf16.mxu1 %v3004_v34  ;;  %v2563_v24 = vpop.f32.mrb[103].mxu0  ;;  %3045 = vmatpush1.bf16.msra.mxu0 %v3001_v62  ;;  %v2969_v5 = vmax.f32 %v2558_v12, 0.0 }
 0x3fc   : > { %v2615_v25 = vadd.f32 %v2614_v23, %v4838_v16  ;;  %v2564_v29 = vadd.f32 %v2563_v24, %v4838_v16  ;;  %v2616_v31 = vpop.f32.mrb[103].mxu1  ;;  %3086 = vmatpush1.bf16.msra.mxu1 %v3003_v2  ;;  %v2971_v39 = vmax.f32 %v2611_v15, 0.0  ;;  %v2970_v43 = vmax.f32 %v2560_v17, 0.0 }
 0x3fd   : > { %v2985_v28 = vmax.f32 %v2562_v20, 0.0  ;;  %v2617_v38 = vadd.f32 %v2616_v31, %v4838_v16  ;;  %v2972_v46 = vmax.f32 %v2613_v41, 0.0 }
 0x3fe   : > { %v2987_v44 = vmax.f32 %v2615_v25, 0.0  ;;  %v2986_v45 = vmax.f32 %v2564_v29, 0.0 }
 0x3ff   : > { %v3017_v49 = vpack.c.bf16 %v2985_v28, %v2969_v5  ;;  %v2988_v4 = vmax.f32 %v2617_v38, 0.0 }
 0x400   : > { %v3019_v51 = vpack.c.bf16 %v2987_v44, %v2971_v39  ;;  %v3018_v35 = vpack.c.bf16 %v2986_v45, %v2970_v43  ;;  %v2653_v53 = vpop.f32.mrb[104].mxu0 }
 0x401   : > { %v3020_v13 = vpack.c.bf16 %v2988_v4, %v2972_v46  ;;  %v2654_v37 = vadd.f32 %v2653_v53, %v4824_v54  ;;  %v2706_v56 = vpop.f32.mrb[104].mxu1  ;;  %v2655_v48 = vpop.f32.mrb[105].mxu0 }
 0x402   : > { %v2707_v57 = vadd.f32 %v2706_v56, %v4824_v54  ;;  %v2656_v3 = vadd.f32 %v2655_v48, %v4824_v54  ;;  %v2708_v18 = vpop.f32.mrb[105].mxu1  ;;  %v2657_v1 = vpop.f32.mrb[106].mxu0  ;;  %3046 = vmatprep.subr.bf16.mxu0 %v3018_v35 }
 0x403   : > { %v2709_v22 = vadd.f32 %v2708_v18, %v4824_v54  ;;  %v2658_v32 = vadd.f32 %v2657_v1, %v4826_v55  ;;  %v2710_v27 = vpop.f32.mrb[106].mxu1  ;;  %3087 = vmatprep.subr.bf16.mxu1 %v3020_v13  ;;  %v2659_v33 = vpop.f32.mrb[107].mxu0  ;;  %3047 = vmatpush1.bf16.msra.mxu0 %v3017_v49  ;;  %v2941_v6 = vmax.f32 %v2654_v37, 0.0 }
 0x404   : > { %v2711_v42 = vadd.f32 %v2710_v27, %v4826_v55  ;;  %v2660_v47 = vadd.f32 %v2659_v33, %v4826_v55  ;;  %v2712_v40 = vpop.f32.mrb[107].mxu1  ;;  %3088 = vmatpush1.bf16.msra.mxu1 %v3019_v51  ;;  %v2943_v10 = vmax.f32 %v2707_v57, 0.0  ;;  %v2942_v30 = vmax.f32 %v2656_v3, 0.0 }
 0x405   : > { %v2957_v8 = vmax.f32 %v2658_v32, 0.0  ;;  %v2713_v9 = vadd.f32 %v2712_v40, %v4826_v55  ;;  %v2944_v59 = vmax.f32 %v2709_v22, 0.0 }
 0x406   : > { %v2959_v52 = vmax.f32 %v2711_v42, 0.0  ;;  %v2958_v58 = vmax.f32 %v2660_v47, 0.0  ;;  %3678 = vmatmul.mubr.msk.bf16.vlgmr.msra.gmra.mrb[128].mxu0 %vm894_vm3, %v4851_v26 }
 0x407   : > { %v3005_v61 = vpack.c.bf16 %v2957_v8, %v2941_v6  ;;  %v2960_v62 = vmax.f32 %v2713_v9, 0.0  ;;  %3679 = vmatmul.mubr.msk.bf16.vlgmr.msra.gmra.mrb[128].mxu1 %vm894_vm3, %v4851_v26  ;;  %3158 = vmatprep.mubr.bf16.mxu0 %v4022_v0 }
 0x408   : > { %v3007_v63 = vpack.c.bf16 %v2959_v52, %v2943_v10  ;;  %v3006_v2 = vpack.c.bf16 %v2958_v58, %v2942_v30  ;;  %v2663_v7 = vpop.f32.mrb[108].mxu0  ;;  %3199 = vmatprep.mubr.bf16.mxu1 %v4022_v0 }
 0x409   : > { %v3008_v11 = vpack.c.bf16 %v2960_v62, %v2944_v59  ;;  %v2664_v34 = vadd.f32 %v2663_v7, %v4836_v60  ;;  %v2716_v12 = vpop.f32.mrb[108].mxu1  ;;  %v2665_v14 = vpop.f32.mrb[109].mxu0 }
 0x40a   : > { %v2717_v21 = vadd.f32 %v2716_v12, %v4836_v60  ;;  %v2666_v15 = vadd.f32 %v2665_v14, %v4836_v60  ;;  %v2718_v17 = vpop.f32.mrb[109].mxu1  ;;  %v2667_v36 = vpop.f32.mrb[110].mxu0  ;;  %3126 = vmatprep.subr.bf16.mxu0 %v3006_v2 }
 0x40b   : > { %v2719_v19 = vadd.f32 %v2718_v17, %v4836_v60  ;;  %v2668_v41 = vadd.f32 %v2667_v36, %v4838_v16  ;;  %v2720_v20 = vpop.f32.mrb[110].mxu1  ;;  %3167 = vmatprep.subr.bf16.mxu1 %v3008_v11  ;;  %v2669_v23 = vpop.f32.mrb[111].mxu0  ;;  %3127 = vmatpush1.bf16.msra.mxu0 %v3005_v61  ;;  %v2973_v31 = vmax.f32 %v2664_v34, 0.0 }
 0x40c   : > { %v2721_v24 = vadd.f32 %v2720_v20, %v4838_v16  ;;  %v2670_v25 = vadd.f32 %v2669_v23, %v4838_v16  ;;  %v2722_v29 = vpop.f32.mrb[111].mxu1  ;;  %3168 = vmatpush1.bf16.msra.mxu1 %v3007_v63  ;;  %v2975_v38 = vmax.f32 %v2717_v21, 0.0  ;;  %v2974_v39 = vmax.f32 %v2666_v15, 0.0 }
 0x40d   : > { %v2989_v5 = vmax.f32 %v2668_v41, 0.0  ;;  %v2723_v28 = vadd.f32 %v2722_v29, %v4838_v16  ;;  %v2976_v45 = vmax.f32 %v2719_v19, 0.0 }
 0x40e   : > { %v2991_v43 = vmax.f32 %v2721_v24, 0.0  ;;  %v2990_v44 = vmax.f32 %v2670_v25, 0.0 }
 0x40f   : > { %v3021_v46 = vpack.c.bf16 %v2989_v5, %v2973_v31  ;;  %v2992_v49 = vmax.f32 %v2723_v28, 0.0 }
 0x410   : > { %v3023_v4 = vpack.c.bf16 %v2991_v43, %v2975_v38  ;;  %v3022_v50 = vpack.c.bf16 %v2990_v44, %v2974_v39  ;;  %v2759_v51 = vpop.f32.mrb[112].mxu0 }
 0x411   : > { %v3024_v35 = vpack.c.bf16 %v2992_v49, %v2976_v45  ;;  %v2760_v53 = vadd.f32 %v2759_v51, %v4824_v54  ;;  %v2812_v13 = vpop.f32.mrb[112].mxu1  ;;  %v2761_v37 = vpop.f32.mrb[113].mxu0 }
 0x412   : > { %v2813_v56 = vadd.f32 %v2812_v13, %v4824_v54  ;;  %v2762_v48 = vadd.f32 %v2761_v37, %v4824_v54  ;;  %v2814_v57 = vpop.f32.mrb[113].mxu1  ;;  %v2763_v3 = vpop.f32.mrb[114].mxu0  ;;  %3128 = vmatprep.subr.bf16.mxu0 %v3022_v50 }
 0x413   : > { %v2815_v18 = vadd.f32 %v2814_v57, %v4824_v54  ;;  %v2764_v1 = vadd.f32 %v2763_v3, %v4826_v55  ;;  %v2816_v22 = vpop.f32.mrb[114].mxu1  ;;  %3169 = vmatprep.subr.bf16.mxu1 %v3024_v35  ;;  %v2765_v32 = vpop.f32.mrb[115].mxu0  ;;  %3129 = vmatpush1.bf16.msra.mxu0 %v3021_v46  ;;  %v2945_v47 = vmax.f32 %v2760_v53, 0.0 }
 0x414   : > { %v2817_v27 = vadd.f32 %v2816_v22, %v4826_v55  ;;  %v2766_v33 = vadd.f32 %v2765_v32, %v4826_v55  ;;  %v2818_v42 = vpop.f32.mrb[115].mxu1  ;;  %3170 = vmatpush1.bf16.msra.mxu1 %v3023_v4  ;;  %v2947_v8 = vmax.f32 %v2813_v56, 0.0  ;;  %v2946_v9 = vmax.f32 %v2762_v48, 0.0 }
 0x415   : > { %v2961_v40 = vmax.f32 %v2764_v1, 0.0  ;;  %v2819_v6 = vadd.f32 %v2818_v42, %v4826_v55  ;;  %v2948_v52 = vmax.f32 %v2815_v18, 0.0 }
 0x416   : > { %v2963_v10 = vmax.f32 %v2817_v27, 0.0  ;;  %v2962_v30 = vmax.f32 %v2766_v33, 0.0  ;;  %3680 = vmatmul.mubr.msk.bf16.vlgmr.msra.gmra.mrb[132].mxu0 %vm894_vm3, %v4851_v26 }
 0x417   : > { %v3009_v58 = vpack.c.bf16 %v2961_v40, %v2945_v47  ;;  %v2964_v59 = vmax.f32 %v2819_v6, 0.0  ;;  %3681 = vmatmul.mubr.msk.bf16.vlgmr.msra.gmra.mrb[132].mxu1 %vm894_vm3, %v4851_v26  ;;  %3240 = vmatprep.mubr.bf16.mxu0 %v4022_v0 }
 0x418   : > { %v3011_v61 = vpack.c.bf16 %v2963_v10, %v2947_v8  ;;  %v3010_v62 = vpack.c.bf16 %v2962_v30, %v2946_v9  ;;  %v2769_v63 = vpop.f32.mrb[116].mxu0  ;;  %3281 = vmatprep.mubr.bf16.mxu1 %v4022_v0 }
 0x419   : > { %v3012_v2 = vpack.c.bf16 %v2964_v59, %v2948_v52  ;;  %v2770_v7 = vadd.f32 %v2769_v63, %v4836_v60  ;;  %v2822_v11 = vpop.f32.mrb[116].mxu1  ;;  %v2771_v34 = vpop.f32.mrb[117].mxu0 }
 0x41a   : > { %v2823_v12 = vadd.f32 %v2822_v11, %v4836_v60  ;;  %v2772_v14 = vadd.f32 %v2771_v34, %v4836_v60  ;;  %v2824_v21 = vpop.f32.mrb[117].mxu1  ;;  %v2773_v15 = vpop.f32.mrb[118].mxu0  ;;  %3208 = vmatprep.subr.bf16.mxu0 %v3010_v62 }
 0x41b   : > { %v2825_v17 = vadd.f32 %v2824_v21, %v4836_v60  ;;  %v2774_v36 = vadd.f32 %v2773_v15, %v4838_v16  ;;  %v2826_v19 = vpop.f32.mrb[118].mxu1  ;;  %3249 = vmatprep.subr.bf16.mxu1 %v3012_v2  ;;  %v2775_v41 = vpop.f32.mrb[119].mxu0  ;;  %3209 = vmatpush1.bf16.msra.mxu0 %v3009_v58  ;;  %v2977_v25 = vmax.f32 %v2770_v7, 0.0 }
 0x41c   : > { %v2827_v20 = vadd.f32 %v2826_v19, %v4838_v16  ;;  %v2776_v23 = vadd.f32 %v2775_v41, %v4838_v16  ;;  %v2828_v24 = vpop.f32.mrb[119].mxu1  ;;  %3250 = vmatpush1.bf16.msra.mxu1 %v3011_v61  ;;  %v2979_v5 = vmax.f32 %v2823_v12, 0.0  ;;  %v2978_v28 = vmax.f32 %v2772_v14, 0.0 }
 0x41d   : > { %v2993_v29 = vmax.f32 %v2774_v36, 0.0  ;;  %v2829_v31 = vadd.f32 %v2828_v24, %v4838_v16  ;;  %v2980_v43 = vmax.f32 %v2825_v17, 0.0 }
 0x41e   : > { %v2995_v38 = vmax.f32 %v2827_v20, 0.0  ;;  %v2994_v39 = vmax.f32 %v2776_v23, 0.0 }
 0x41f   : > { %v3025_v44 = vpack.c.bf16 %v2993_v29, %v2977_v25  ;;  %v2996_v45 = vmax.f32 %v2829_v31, 0.0 }
 0x420   : > { %v3027_v46 = vpack.c.bf16 %v2995_v38, %v2979_v5  ;;  %v3026_v49 = vpack.c.bf16 %v2994_v39, %v2978_v28  ;;  %v2865_v4 = vpop.f32.mrb[120].mxu0 }
 0x421   : > { %v3028_v50 = vpack.c.bf16 %v2996_v45, %v2980_v43  ;;  %v2866_v51 = vadd.f32 %v2865_v4, %v4824_v54  ;;  %v2918_v35 = vpop.f32.mrb[120].mxu1  ;;  %v2867_v53 = vpop.f32.mrb[121].mxu0 }
 0x422   : > { %v2919_v13 = vadd.f32 %v2918_v35, %v4824_v54  ;;  %v2868_v37 = vadd.f32 %v2867_v53, %v4824_v54  ;;  %v2920_v56 = vpop.f32.mrb[121].mxu1  ;;  %v2869_v48 = vpop.f32.mrb[122].mxu0  ;;  %3210 = vmatprep.subr.bf16.mxu0 %v3026_v49 }
 0x423   : > { %v2921_v57 = vadd.f32 %v2920_v56, %v4824_v54  ;;  %v2870_v3 = vadd.f32 %v2869_v48, %v4826_v55  ;;  %v2922_v18 = vpop.f32.mrb[122].mxu1  ;;  %3251 = vmatprep.subr.bf16.mxu1 %v3028_v50  ;;  %v2871_v1 = vpop.f32.mrb[123].mxu0  ;;  %3211 = vmatpush1.bf16.msra.mxu0 %v3025_v44  ;;  %v2949_v33 = vmax.f32 %v2866_v51, 0.0 }
 0x424   : > { %v2923_v22 = vadd.f32 %v2922_v18, %v4826_v55  ;;  %v2872_v32 = vadd.f32 %v2871_v1, %v4826_v55  ;;  %v2924_v27 = vpop.f32.mrb[123].mxu1  ;;  %3252 = vmatpush1.bf16.msra.mxu1 %v3027_v46  ;;  %v2951_v40 = vmax.f32 %v2919_v13, 0.0  ;;  %v2950_v6 = vmax.f32 %v2868_v37, 0.0 }
 0x425   : > { %v2965_v42 = vmax.f32 %v2870_v3, 0.0  ;;  %v2925_v47 = vadd.f32 %v2924_v27, %v4826_v55  ;;  %v2952_v9 = vmax.f32 %v2921_v57, 0.0 }
 0x426   : > { %v2967_v8 = vmax.f32 %v2923_v22, 0.0  ;;  %v2966_v54 = vmax.f32 %v2872_v32, 0.0  ;;  %3682 = vmatmul.mubr.msk.bf16.vlgmr.msra.gmra.mrb[136].mxu0 %vm894_vm3, %v4851_v26 }
 0x427   : > { %v3013_v10 = vpack.c.bf16 %v2965_v42, %v2949_v33  ;;  %v2968_v30 = vmax.f32 %v2925_v47, 0.0  ;;  %3683 = vmatmul.mubr.msk.bf16.vlgmr.msra.gmra.mrb[136].mxu1 %vm894_vm3, %v4851_v26  ;;  %3322 = vmatprep.mubr.bf16.mxu0 %v4022_v0 }
 0x428   : > { %v3015_v52 = vpack.c.bf16 %v2967_v8, %v2951_v40  ;;  %v3014_v58 = vpack.c.bf16 %v2966_v54, %v2950_v6  ;;  %v2875_v59 = vpop.f32.mrb[124].mxu0  ;;  %3363 = vmatprep.mubr.bf16.mxu1 %v4022_v0 }
 0x429   : > { %v3016_v55 = vpack.c.bf16 %v2968_v30, %v2952_v9  ;;  %v2876_v61 = vadd.f32 %v2875_v59, %v4836_v60  ;;  %v2928_v62 = vpop.f32.mrb[124].mxu1  ;;  %v2877_v63 = vpop.f32.mrb[125].mxu0 }
 0x42a   : > { %v2929_v2 = vadd.f32 %v2928_v62, %v4836_v60  ;;  %v2878_v7 = vadd.f32 %v2877_v63, %v4836_v60  ;;  %v2930_v11 = vpop.f32.mrb[125].mxu1  ;;  %v2879_v34 = vpop.f32.mrb[126].mxu0  ;;  %3290 = vmatprep.subr.bf16.mxu0 %v3014_v58 }
 0x42b   : > { %v2931_v12 = vadd.f32 %v2930_v11, %v4836_v60  ;;  %v2880_v14 = vadd.f32 %v2879_v34, %v4838_v16  ;;  %v2932_v21 = vpop.f32.mrb[126].mxu1  ;;  %3331 = vmatprep.subr.bf16.mxu1 %v3016_v55  ;;  %v2881_v15 = vpop.f32.mrb[127].mxu0  ;;  %3291 = vmatpush1.bf16.msra.mxu0 %v3013_v10  ;;  %v2981_v19 = vmax.f32 %v2876_v61, 0.0 }
 0x42c   : > { %v2933_v0 = vadd.f32 %v2932_v21, %v4838_v16  ;;  %v2882_v17 = vadd.f32 %v2881_v15, %v4838_v16  ;;  %v2934_v36 = vpop.f32.mrb[127].mxu1  ;;  %3332 = vmatpush1.bf16.msra.mxu1 %v3015_v52  ;;  %v2983_v23 = vmax.f32 %v2929_v2, 0.0  ;;  %v2982_v24 = vmax.f32 %v2878_v7, 0.0 }
 0x42d   : > { %v2997_v41 = vmax.f32 %v2880_v14, 0.0  ;;  %v2935_v20 = vadd.f32 %v2934_v36, %v4838_v16  ;;  %v2984_v29 = vmax.f32 %v2931_v12, 0.0  ;;  %v4920_v16 = vpop.permute.xlu0 %3038 }
 0x42e   : > { %v2999_v25 = vmax.f32 %v2933_v0, 0.0  ;;  %v2998_v60 = vmax.f32 %v2882_v17, 0.0 }
 0x42f   : > { %v3029_v31 = vpack.c.bf16 %v2997_v41, %v2981_v19  ;;  %v3000_v5 = vmax.f32 %v2935_v20, 0.0 }
 0x430   : > { %v3031_v28 = vpack.c.bf16 %v2999_v25, %v2983_v23  ;;  %v3030_v38 = vpack.c.bf16 %v2998_v60, %v2982_v24 }
 0x431   : > { %v3032_v39 = vpack.c.bf16 %v3000_v5, %v2984_v29 }
 0x432   : > { %3292 = vmatprep.subr.bf16.mxu0 %v3030_v38 }
 0x433   : > { %3333 = vmatprep.subr.bf16.mxu1 %v3032_v39  ;;  %3293 = vmatpush1.bf16.msra.mxu0 %v3029_v31 }
 0x434   : > { %3334 = vmatpush1.bf16.msra.mxu1 %v3031_v28 }
 0x436   : > { %3684 = vmatmul.mubr.msk.bf16.vlgmr.msra.gmra.mrb[140].mxu0 %vm894_vm3, %v4851_v26 }
 0x437   : > { %3685 = vmatmul.mubr.msk.bf16.vlgmr.msra.gmra.mrb[140].mxu1 %vm894_vm3, %v4851_v26 }
 0x4d9   : > { %v3078_v43 = vpop.f32.mrb[128].mxu0 }
 0x4da   : > { %v3079_v44 = vadd.f32 %v3078_v43, %v4920_v16  ;;  %v3119_v45 = vpop.f32.mrb[128].mxu1  ;;  %v3080_v46 = vpop.f32.mrb[129].mxu0 }
 0x4db   : > { %v3120_v49 = vadd.f32 %v3119_v45, %v4920_v16  ;;  %v3081_v4 = vadd.f32 %v3080_v46, %v4920_v16  ;;  %v3121_v50 = vpop.f32.mrb[129].mxu1  ;;  %v3082_v51 = vpop.f32.mrb[130].mxu0 }
 0x4dc   : > { %v3372_v35 = vsub.f32 0.0, %v3079_v44  ;;  %v3122_v53 = vadd.f32 %v3121_v50, %v4920_v16  ;;  %v3123_v13 = vpop.f32.mrb[130].mxu1  ;;  %v3083_v37 = vpop.f32.mrb[131].mxu0 }
 0x4dd   : > { %v3374_v56 = vsub.f32 0.0, %v3120_v49  ;;  %v3373_v26 = vsub.f32 0.0, %v3081_v4  ;;  %v3124_v48 = vpop.f32.mrb[131].mxu1 }
 0x4de   : > { %v3388_v57 = vmul.f32 1.442695, %v3372_v35  ;;  %v3375_v3 = vsub.f32 0.0, %v3122_v53 }
 0x4df   : > { %v3392_v18 = vmul.f32 1.442695, %v3374_v56  ;;  %v3390_v1 = vmul.f32 1.442695, %v3373_v26 }
 0x4e0   : > { %3822 = vpow2.f32 %v3388_v57  ;;  %v3394_v22 = vmul.f32 1.442695, %v3375_v3 }
 0x4e1   : > { %3824 = vpow2.f32 %v3392_v18 }
 0x4e2   : > { %3826 = vpow2.f32 %v3390_v1 }
 0x4e3   : > { %3828 = vpow2.f32 %v3394_v22 }
 0x4e9   : > { %v3160_v32 = vpop.f32.mrb[132].mxu0 }
 0x4ea   : > { %v3823_v27 = vpop.eup %3822  ;;  %v3161_v33 = vadd.f32 %v3160_v32, %v4920_v16  ;;  %v3201_v42 = vpop.f32.mrb[132].mxu1 }
 0x4eb   : > { %v3162_v47 = vpop.f32.mrb[133].mxu0  ;;  %v3825_v40 = vpop.eup %3824  ;;  %v3420_v6 = vadd.f32 1.0, %v3823_v27  ;;  %v3202_v8 = vadd.f32 %v3201_v42, %v4920_v16 }
 0x4ec   : > { %v3163_v54 = vadd.f32 %v3162_v47, %v4920_v16  ;;  %v3203_v9 = vpop.f32.mrb[133].mxu1  ;;  %v3164_v10 = vpop.f32.mrb[134].mxu0  ;;  %v3422_v52 = vadd.f32 1.0, %v3825_v40  ;;  %v3376_v58 = vsub.f32 0.0, %v3161_v33 }
 0x4ed   : > { %v3827_v30 = vpop.eup %3826  ;;  %v3204_v59 = vadd.f32 %v3203_v9, %v4920_v16  ;;  %v3205_v55 = vpop.f32.mrb[134].mxu1  ;;  %3830 = vrcp.f32 %v3420_v6  ;;  %v3378_v2 = vsub.f32 0.0, %v3202_v8 }
 0x4ee   : > { %v3165_v61 = vpop.f32.mrb[135].mxu0  ;;  %v3829_v62 = vpop.eup %3828  ;;  %v3421_v63 = vadd.f32 1.0, %v3827_v30  ;;  %v3377_v7 = vsub.f32 0.0, %v3163_v54  ;;  %3832 = vrcp.f32 %v3422_v52  ;;  %v3396_v12 = vmul.f32 1.442695, %v3376_v58 }
 0x4ef   : > { %v3206_v11 = vpop.f32.mrb[135].mxu1  ;;  %v3423_v34 = vadd.f32 1.0, %v3829_v62  ;;  %v3379_v14 = vsub.f32 0.0, %v3204_v59  ;;  %v3400_v21 = vmul.f32 1.442695, %v3378_v2 }
 0x4f0   : > { %3834 = vrcp.f32 %v3421_v63  ;;  %v3398_v15 = vmul.f32 1.442695, %v3377_v7 }
 0x4f1   : > { %3836 = vrcp.f32 %v3423_v34  ;;  %v3402_v0 = vmul.f32 1.442695, %v3379_v14 }
 0x4f2   : > { %3838 = vpow2.f32 %v3396_v12 }
 0x4f3   : > { %3840 = vpow2.f32 %v3400_v21 }
 0x4f4   : > { %3842 = vpow2.f32 %v3398_v15 }
 0x4f5   : > { %3844 = vpow2.f32 %v3402_v0 }
 0x4f7   : > { %v3831_v17 = vpop.eup %3830 }
 0x4f8   : > { %v3833_v36 = vpop.eup %3832 }
 0x4f9   : > { %v3242_v41 = vpop.f32.mrb[136].mxu0 }
 0x4fa   : > { %v3835_v19 = vpop.eup %3834  ;;  %v3243_v24 = vadd.f32 %v3242_v41, %v4920_v16  ;;  %v3283_v25 = vpop.f32.mrb[136].mxu1 }
 0x4fb   : > { %v3837_v20 = vpop.eup %3836  ;;  %v3468_v23 = vcombine.low %v3831_v17, %v3835_v19  ;;  %v3244_v60 = vpop.f32.mrb[137].mxu0  ;;  %v3284_v5 = vadd.f32 %v3283_v25, %v4920_v16 }
 0x4fc   : > { %v3839_v29 = vpop.eup %3838  ;;  %v3469_v31 = vcombine.low %v3833_v36, %v3837_v20  ;;  %v3245_v28 = vadd.f32 %v3244_v60, %v4920_v16  ;;  %v3285_v38 = vpop.f32.mrb[137].mxu1  ;;  %v3380_v45 = vsub.f32 0.0, %v3243_v24 }
 0x4fd   : > { %v3246_v39 = vpop.f32.mrb[138].mxu0  ;;  %v3841_v43 = vpop.eup %3840  ;;  %3484 = vst [vmem:[%s4934_s17] sm:$0x77] %v3468_v23  ;;  %v3424_v44 = vadd.f32 1.0, %v3839_v29  ;;  %v3286_v46 = vadd.f32 %v3285_v38, %v4920_v16  ;;  %v3382_v35 = vsub.f32 0.0, %v3284_v5 }
 0x4fe   : > { %v3287_v49 = vpop.f32.mrb[138].mxu1  ;;  %v3247_v4 = vpop.f32.mrb[139].mxu0  ;;  %3485 = vst [vmem:[%s4934_s17 + $0x8] sm:$0x77] %v3469_v31  ;;  %v3426_v51 = vadd.f32 1.0, %v3841_v43  ;;  %v3381_v53 = vsub.f32 0.0, %v3245_v28 }
 0x4ff   : > { %v3843_v50 = vpop.eup %3842  ;;  %v3288_v13 = vpop.f32.mrb[139].mxu1  ;;  %3846 = vrcp.f32 %v3424_v44  ;;  %v3404_v26 = vmul.f32 1.442695, %v3380_v45  ;;  %v3383_v48 = vsub.f32 0.0, %v3286_v46  ;;  %v3408_v3 = vmul.f32 1.442695, %v3382_v35 }
 0x500   : > { %v3845_v37 = vpop.eup %3844  ;;  %v3425_v56 = vadd.f32 1.0, %v3843_v50  ;;  %3848 = vrcp.f32 %v3426_v51  ;;  %v3406_v18 = vmul.f32 1.442695, %v3381_v53 }
 0x501   : > { %v3427_v57 = vadd.f32 1.0, %v3845_v37  ;;  %v3410_v1 = vmul.f32 1.442695, %v3383_v48 }
 0x502   : > { %3850 = vrcp.f32 %v3425_v56 }
 0x503   : > { %3852 = vrcp.f32 %v3427_v57 }
 0x504   : > { %3854 = vpow2.f32 %v3404_v26 }
 0x505   : > { %3856 = vpow2.f32 %v3408_v3 }
 0x506   : > { %3858 = vpow2.f32 %v3406_v18 }
 0x507   : > { %3860 = vpow2.f32 %v3410_v1 }
 0x509   : > { %v3847_v22 = vpop.eup %3846  ;;  %v3324_v27 = vpop.f32.mrb[140].mxu0 }
 0x50a   : > { %v3849_v32 = vpop.eup %3848  ;;  %v3325_v42 = vadd.f32 %v3324_v27, %v4920_v16  ;;  %v3365_v47 = vpop.f32.mrb[140].mxu1 }
 0x50b   : > { %v3326_v40 = vpop.f32.mrb[141].mxu0  ;;  %v3366_v54 = vadd.f32 %v3365_v47, %v4920_v16  ;;  %v3367_v10 = vpop.f32.mrb[141].mxu1 }
 0x50c   : > { %v3851_v33 = vpop.eup %3850  ;;  %v3327_v9 = vadd.f32 %v3326_v40, %v4920_v16  ;;  %v3328_v30 = vpop.f32.mrb[142].mxu0  ;;  %v3384_v59 = vsub.f32 0.0, %v3325_v42  ;;  %v3368_v55 = vadd.f32 %v3367_v10, %v4920_v16 }
 0x50d   : > { %v3853_v6 = vpop.eup %3852  ;;  %v3470_v8 = vcombine.low %v3847_v22, %v3851_v33  ;;  %v3369_v61 = vpop.f32.mrb[142].mxu1  ;;  %v3386_v7 = vsub.f32 0.0, %v3366_v54 }
 0x50e   : > { %v3855_v52 = vpop.eup %3854  ;;  %v3471_v58 = vcombine.low %v3849_v32, %v3853_v6  ;;  %v3329_v62 = vpop.f32.mrb[143].mxu0  ;;  %v3385_v11 = vsub.f32 0.0, %v3327_v9  ;;  %v3387_v21 = vsub.f32 0.0, %v3368_v55  ;;  %v3412_v17 = vmul.f32 1.442695, %v3384_v59 }
 0x50f   : > { %v3857_v63 = vpop.eup %3856  ;;  %3486 = vst [vmem:[%s4934_s17 + $0x10] sm:$0x77] %v3470_v8  ;;  %v3428_v2 = vadd.f32 1.0, %v3855_v52  ;;  %v3370_v34 = vpop.f32.mrb[143].mxu1  ;;  %v3416_v19 = vmul.f32 1.442695, %v3386_v7 }
 0x510   : > { %v3859_v12 = vpop.eup %3858  ;;  %3487 = vst [vmem:[%s4934_s17 + $0x18] sm:$0x77] %v3471_v58  ;;  %v3430_v14 = vadd.f32 1.0, %v3857_v63  ;;  %v3414_v16 = vmul.f32 1.442695, %v3385_v11 }
 0x511   : > { %v3861_v15 = vpop.eup %3860  ;;  %3862 = vrcp.f32 %v3428_v2  ;;  %v3429_v0 = vadd.f32 1.0, %v3859_v12  ;;  %v3418_v41 = vmul.f32 1.442695, %v3387_v21 }
 0x512   : > { %3864 = vrcp.f32 %v3430_v14  ;;  %v3431_v36 = vadd.f32 1.0, %v3861_v15 }
 0x513   : > { %3866 = vrcp.f32 %v3429_v0 }
 0x514   : > { %3868 = vrcp.f32 %v3431_v36 }
 0x515   : > { %3870 = vpow2.f32 %v3412_v17 }
 0x516   : > { %3872 = vpow2.f32 %v3416_v19 }
 0x517   : > { %3874 = vpow2.f32 %v3414_v16 }
 0x518   : > { %3876 = vpow2.f32 %v3418_v41 }
 0x51b   : > { %v3863_v20 = vpop.eup %3862 }
 0x51c   : > { %v3865_v23 = vpop.eup %3864 }
 0x51d   : > { %v3867_v24 = vpop.eup %3866 }
 0x51e   : > { %v3869_v25 = vpop.eup %3868  ;;  %v3472_v60 = vcombine.low %v3863_v20, %v3867_v24 }
 0x51f   : > { %v3871_v29 = vpop.eup %3870  ;;  %v3473_v31 = vcombine.low %v3865_v23, %v3869_v25 }
 0x520   : > { %v3873_v5 = vpop.eup %3872  ;;  %3488 = vst [vmem:[%s4934_s17 + $0x20] sm:$0x77] %v3472_v60  ;;  %v3432_v28 = vadd.f32 1.0, %v3871_v29 }
 0x521   : > { %v3875_v38 = vpop.eup %3874  ;;  %3489 = vst [vmem:[%s4934_s17 + $0x28] sm:$0x77] %v3473_v31  ;;  %v3434_v39 = vadd.f32 1.0, %v3873_v5 }
 0x522   : > { %v3877_v43 = vpop.eup %3876  ;;  %3878 = vrcp.f32 %v3432_v28  ;;  %v3433_v44 = vadd.f32 1.0, %v3875_v38 }
 0x523   : > { %3880 = vrcp.f32 %v3434_v39  ;;  %v3435_v45 = vadd.f32 1.0, %v3877_v43 }
 0x524   : > { %3882 = vrcp.f32 %v3433_v44 }
 0x525   : > { %3884 = vrcp.f32 %v3435_v45 }
 0x52c   : > { %v3879_v46 = vpop.eup %3878 }
 0x52d   : > { %v3881_v49 = vpop.eup %3880 }
 0x52e   : > { %v3883_v4 = vpop.eup %3882 }
 0x52f   : > { %v3885_v50 = vpop.eup %3884  ;;  %v3474_v51 = vcombine.low %v3879_v46, %v3883_v4 }
 0x530   : > { %v3475_v35 = vcombine.low %v3881_v49, %v3885_v50 }
 0x531   : > { %3490 = vst [vmem:[%s4934_s17 + $0x30] sm:$0x77] %v3474_v51 }
 0x532   : > { %3491 = vst [vmem:[%s4934_s17 + $0x38] sm:$0x77] %v3475_v35 }
 0x533   : > { %3957 = shalt.err (!%p3954_p11)
}
 0x534   : > { %s3958_s11 = scalar_lea.hbm %s4952_s6, 1024  ;;  %s3962_s10 = scalar_lea.hbm %s5000_s3, 4096 }
 0x535   : > { %p3959_p13 = scmp.ne.s32.totalorder %s4952_s6, %s3958_s11  ;;  %p3963_p12 = scmp.lt.u32.totalorder %s4952_s6, %s5000_s3 }
 0x536   : > { %p3964_p3 = scmp.lt.u32.totalorder %s3962_s10, %s3958_s11  ;;  %p3966_p8 = scmp.lt.u32.totalorder %s3958_s11, %s4952_s6 }
 0x537   : > { %p3960_p2 = pnand %p3959_p13, %p5018_p9 }
 0x538   : > { %p3965_p7 = por %p3964_p3, %p3963_p12 }
 0x539   : > { %p3961_p6 = pneg %p3960_p2 }
 0x53a   : > { %p3967_p10 = por %p3966_p8, %p3965_p7 }
 0x53c   : > { %p3968_p1 = pnand %p3967_p10, %p3961_p6 }
 0x53e   : > { %3971 = shalt.err (!%p3968_p1)
}
 0x53f   : > { %3763 = dma.vmem_to_hbm [thread:$0]  (%p5018_p9), %s4954_s29, 1024, %s4952_s6, %s3493_s27  }
 0x540 PF: > { %p3780_p4 = scmp.ge.s32.totalorder %s4014_s15, 2  ;;  %s3519_s23 = sand.u32 1, %s4002_s12  }
 0x541   : > { %p5019_p0 = scmp.ne.s32.totalorder %s5008_s25, 0  ;;  %s3520_s26 = scalar_lea.sflag [#allocation4], %s3519_s23 }
 0x543   : > { %p3774_p5 = pnand %p3780_p4, %p5019_p0 }
 0x545   : > { %3997 = dma.done.wait (!%p3774_p5), %s3520_s26, 1024  }
 0x546   : > { %3999 = vsyncadd (!%p3774_p5), %s3520_s26, 4294966272  ;;  %p17_p11 = scmp.ge.s32.totalorder %s4070_s18, 6   ;;  %s5020_s12 = smov %s4006_s13 }
 0x547   : > { %s5021_s13 = smov %s4010_s14  ;;  %s5022_s14 = smov %s4082_s21 }
 0x548   : > { %s5023_s15 = smov %s4070_s18  ;;  %19 = sbr.rel (!%p17_p11) target bundleno = 6 (0x6), region = 81 }
 0x54f   :  { %3525 = vsyncpa [#allocation3], 1 }
 0x550   :  { %3527 = vsyncpa [#allocation3 + $0x1], 1 }
 0x551   :  { %3528 = vsyncpa [#allocation6], 1 }
 0x552   :  { %3529 = vsyncpa [#allocation4], 1 }
 0x553   :  { %3531 = vsyncpa [#allocation4 + $0x1], 1 }

</bundles_post_ra>
